<compile_context>
chip_gen: v6e
topology: v6e:2x2x1
jax: 0.10.0
libtpu: 0.0.40
codegen_flags: <defaults>
</compile_context>

<pallas_src>
import functools

import jax
import jax.numpy as jnp
from jax.experimental import pallas as pl
from jax.experimental.pallas import tpu as pltpu


# ----------------------------------------------------------------------------
# helpers
# ----------------------------------------------------------------------------
def _leaky_relu(x, slope=0.1):
    return jnp.maximum(x, slope * x)


def _round_up8(n):
    return ((n + 7) // 8) * 8


_A_BLOCKS = ("wi0x", "wi0t", "wi1", "wa", "wt0", "wt1", "wh0t", "wh0z")
_BIAS_ORDER = ("bi0", "bi1", "g0_bih", "g0_bhh", "g1_bih", "g1_bhh",
               "ba", "bt0", "bt1", "bh0", "bh1")


def _slab_layout(input_dim, hidden_dim, out_features):
    """Shared (wrapper + kernel) static layout of the packed parameter slabs."""
    H = hidden_dim
    # slab A: all weights whose output dim is H, row-stacked, 8-row aligned so
    # every kernel-side slice is a free view of the loaded slab.
    a_rows_per = {"wi0x": input_dim, "wi0t": 1, "wi1": H, "wa": H,
                  "wt0": 1, "wt1": H, "wh0t": H, "wh0z": H}
    a_off, off = {}, 0
    for name in _A_BLOCKS:
        a_off[name] = (off, a_rows_per[name])
        off += _round_up8(a_rows_per[name])
    a_rows = off
    # slab B: the four GRU weights (output dim 3H), 8-row aligned.
    Hp = _round_up8(H)
    b_off = {"g0_wih": 0 * Hp, "g0_whh": 1 * Hp, "g1_wih": 2 * Hp, "g1_whh": 3 * Hp}
    b_rows = 4 * Hp
    # slab bias: one row per bias, columns zero-padded to the widest bias.
    widths = {"bi0": H, "bi1": H, "g0_bih": 3 * H, "g0_bhh": 3 * H,
              "g1_bih": 3 * H, "g1_bhh": 3 * H, "ba": H, "bt0": H,
              "bt1": H, "bh0": H, "bh1": out_features}
    maxw = max(widths.values())
    return a_off, a_rows, b_off, b_rows, widths, maxw


def pack_params(params):
    """Pack the 22 parameter tensors into 4 contiguous slabs (do this once)."""
    input_dim = params["wi0"].shape[0] - 1
    H = params["wi1"].shape[0]
    F = params["wh1"].shape[1]
    a_off, a_rows, b_off, b_rows, widths, maxw = _slab_layout(input_dim, H, F)

    a_vals = {
        "wi0x": params["wi0"][:input_dim],
        "wi0t": params["wi0"][input_dim:input_dim + 1],
        "wi1": params["wi1"], "wa": params["wa"],
        "wt0": params["wt0"], "wt1": params["wt1"],
        "wh0t": params["wh0"][:H], "wh0z": params["wh0"][H:],
    }
    slab_a = jnp.zeros((a_rows, H), jnp.float32)
    for name, (off, rows) in a_off.items():
        slab_a = slab_a.at[off:off + rows, :].set(a_vals[name].astype(jnp.float32))

    slab_b = jnp.zeros((b_rows, 3 * H), jnp.float32)
    for name, off in b_off.items():
        slab_b = slab_b.at[off:off + H, :].set(params[name].astype(jnp.float32))

    slab_bias = jnp.zeros((len(_BIAS_ORDER), maxw), jnp.float32)
    for i, name in enumerate(_BIAS_ORDER):
        w = widths[name]
        slab_bias = slab_bias.at[i, :w].set(
            params[name].reshape(-1).astype(jnp.float32))

    return slab_a, slab_b, slab_bias, params["wh1"].astype(jnp.float32)


def _pick_batch_block(batch, max_block=128, min_grid_steps=2):
    """Largest multiple-of-8 divisor of `batch` below a cap (fallback: batch).

    The cap is lowered to ~batch/min_grid_steps for batch >= 16 so the batch
    grid gets >= min_grid_steps iterations (v7x has two TensorCores; a
    "parallel" grid of length 1 leaves one idle). Pass min_grid_steps=1 on
    single-TC chips (v5e/v6e) to keep the largest block instead.
    """
    cap = max_block
    if min_grid_steps > 1 and batch >= 16:
        cap = min(cap, max(8, (batch // min_grid_steps) // 8 * 8))
    cand = min(cap, batch)
    cand -= cand % 8
    while cand >= 8:
        if batch % cand == 0:
            return cand
        cand -= 8
    # No multiple-of-8 divisor: single block (grid=(1,)); correct but no
    # batch pipelining / megacore sharding.
    return batch


# ----------------------------------------------------------------------------
# kernel
# ----------------------------------------------------------------------------
def _rnn_cnp_kernel(ts_obs_ref, x_obs_ref, ts_unobs_ref,
                    slab_a_ref, slab_b_ref, bias_ref, wh1_ref,
                    out_ref, *, t_scale: float):
    T_obs, Bb, D = x_obs_ref.shape
    T_unobs = ts_unobs_ref.shape[0]
    H = slab_b_ref.shape[1] // 3
    F = wh1_ref.shape[1]
    a_off, _, b_off, _, widths, _ = _slab_layout(D, H, F)

    slab_a = slab_a_ref[...]
    slab_b = slab_b_ref[...]
    bias = bias_ref[...]

    def get_a(name):
        off, rows = a_off[name]
        return slab_a[off:off + rows, :]

    def get_b(name):
        off = b_off[name]
        return slab_b[off:off + H, :]

    bias_row = {name: i for i, name in enumerate(_BIAS_ORDER)}

    def get_bias(name):
        i = bias_row[name]
        return bias[i:i + 1, :widths[name]]

    # ---- parameters: every slice below starts at an 8-aligned row (free) ----
    wi0_x, wi0_t = get_a("wi0x"), get_a("wi0t")      # (D, H), (1, H)
    wi1, w_agg = get_a("wi1"), get_a("wa")           # (H, H), (H, H)
    wt0, wt1 = get_a("wt0"), get_a("wt1")            # (1, H), (H, H)
    wh0_t, wh0_z = get_a("wh0t"), get_a("wh0z")      # (H, H), (H, H)
    wh1 = wh1_ref[...]                               # (H, F)
    g0_wih, g0_whh = get_b("g0_wih"), get_b("g0_whh")
    g1_wih, g1_whh = get_b("g1_wih"), get_b("g1_whh")

    bi0, bi1 = get_bias("bi0"), get_bias("bi1")
    b_agg = get_bias("ba")
    bt0, bt1 = get_bias("bt0"), get_bias("bt1")
    bh0, bh1 = get_bias("bh0"), get_bias("bh1")
    g0_bih = get_bias("g0_bih")
    # Hoist GRU bias broadcasts out of the unrolled recurrence (no CSE in JAX).
    g0_bhh_b = jnp.broadcast_to(get_bias("g0_bhh"), (Bb, 3 * H))
    g1_bih_b = jnp.broadcast_to(get_bias("g1_bih"), (Bb, 3 * H))
    g1_bhh_b = jnp.broadcast_to(get_bias("g1_bhh"), (Bb, 3 * H))

    # ---- to_scaled_relative_ts: relative to first observed timestamp --------
    inv_scale = 1.0 / t_scale
    t0 = ts_obs_ref[0]                                        # (Bb, 1)

    # ---- batched, time-independent encoder work (off the recurrence path) ---
    # Flattened (T*B, feat) 2-D GEMMs: one MXU weight push per layer and no
    # broadcast-weight copies (the lane dim is unchanged by the reshape).
    TB = T_obs * Bb
    ts_rel = ((ts_obs_ref[...] - t0) * inv_scale).reshape(TB, 1)
    x2 = x_obs_ref[...].reshape(TB, D)
    e = _leaky_relu(jnp.dot(x2, wi0_x, preferred_element_type=jnp.float32)
                    + ts_rel * wi0_t + bi0)                   # input2hidden L0
    e = _leaky_relu(jnp.dot(e, wi1, preferred_element_type=jnp.float32) + bi1)
    # layer-0 GRU input projection for all observed steps, in one GEMM.
    gi0_all = jnp.dot(e, g0_wih, preferred_element_type=jnp.float32) + g0_bih

    # ---- sequential 2-layer GRU (only h-dependent matmuls remain) -----------
    def gru_gates(gi, gh, h):
        # PyTorch nn.GRU gate order: [r, z, n]
        r = jax.nn.sigmoid(gi[:, 0:H] + gh[:, 0:H])
        z = jax.nn.sigmoid(gi[:, H:2 * H] + gh[:, H:2 * H])
        n = jnp.tanh(gi[:, 2 * H:3 * H] + r * gh[:, 2 * H:3 * H])
        return (1.0 - z) * n + z * h

    h0 = jnp.zeros((Bb, H), jnp.float32)
    h1 = jnp.zeros((Bb, H), jnp.float32)
    # Static unroll: T_obs is small here.
    # TODO(synk): for T_obs > ~16, switch to lax.fori_loop(..., unroll=True)
    # with gi0_all staged in VMEM scratch to bound live ranges; for H <= 32 on
    # v5e the h-projections could be done on the VPU to skip MXU round-trips.
    for t in range(T_obs):
        gi0 = gi0_all[t * Bb:(t + 1) * Bb, :]
        gh0 = jnp.dot(h0, g0_whh, preferred_element_type=jnp.float32) + g0_bhh_b
        h0 = gru_gates(gi0, gh0, h0)
        gi1 = jnp.dot(h0, g1_wih, preferred_element_type=jnp.float32) + g1_bih_b
        gh1 = jnp.dot(h1, g1_whh, preferred_element_type=jnp.float32) + g1_bhh_b
        h1 = gru_gates(gi1, gh1, h1)

    # ---- deterministic CNP representation: aggregation MLP on final state ---
    zrep = _leaky_relu(jnp.dot(h1, w_agg, preferred_element_type=jnp.float32)
                       + b_agg)
    z_plus = jnp.dot(zrep, wh0_z, preferred_element_type=jnp.float32) + bh0

    # ---- fully-batched decoder over all target steps, single dense store ----
    UB = T_unobs * Bb
    ts_u = ((ts_unobs_ref[...] - t0) * inv_scale).reshape(UB, 1)
    th = _leaky_relu(ts_u * wt0 + bt0)                        # target2hidden L0
    th = _leaky_relu(jnp.dot(th, wt1, preferred_element_type=jnp.float32) + bt1)
    z_all = jnp.broadcast_to(z_plus[None, :, :], (T_unobs, Bb, H)).reshape(UB, H)
    hh = _leaky_relu(jnp.dot(th, wh0_t, preferred_element_type=jnp.float32)
                     + z_all)
    out = jnp.dot(hh, wh1, preferred_element_type=jnp.float32) + bh1
    out_ref[...] = out.reshape(T_unobs, Bb, F)


# ----------------------------------------------------------------------------
# wrapper
# ----------------------------------------------------------------------------
def baseline_rnn_cnp_forward(x_obs, ts_obs, ts_unobs, params, metadata=None, *,
                             t_scale: float = 5.0, max_batch_block: int = 128,
                             min_grid_steps: int = 2):
    """BaselineRNNCNP.forward: (x_obs, ts_obs, ts_unobs, metadata) -> predictions.

    `params` may be the raw dict (packed on the fly) or the tuple returned by
    `pack_params` (preferred: pack once, reuse across calls).
    """
    del metadata  # unused, as in the PyTorch module
    if isinstance(params, dict):
        params = pack_params(params)
    slab_a, slab_b, slab_bias, wh1 = params

    T_obs, B, D = x_obs.shape
    T_unobs = ts_unobs.shape[0]
    H = wh1.shape[0]
    F = wh1.shape[1]                       # 2 * target_dim  (mean | log_var)

    # Batch grid: sequences are independent; large B is split into blocks
    # (multiple of 8) and the axis marked "parallel" so both v7x TensorCores
    # get work (>= 2 grid steps when B >= 16).
    bblk = _pick_batch_block(B, max_batch_block, min_grid_steps)
    grid = (B // bblk,)

    def _slab_spec(arr):
        nd = arr.ndim
        # Constant block index across the grid -> single-buffered: double
        # buffering would give zero pipelining benefit and double VMEM cost.
        return pl.BlockSpec(arr.shape, lambda b, nd=nd: (0,) * nd,
                            pipeline_mode=pl.Buffered(1))

    in_specs = [
        pl.BlockSpec((T_obs, bblk, 1), lambda b: (0, b, 0)),     # ts_obs
        pl.BlockSpec((T_obs, bblk, D), lambda b: (0, b, 0)),     # x_obs
        pl.BlockSpec((T_unobs, bblk, 1), lambda b: (0, b, 0)),   # ts_unobs
        _slab_spec(slab_a), _slab_spec(slab_b),
        _slab_spec(slab_bias), _slab_spec(wh1),
    ]
    out_specs = pl.BlockSpec((T_unobs, bblk, F), lambda b: (0, b, 0))

    # Explicit scoped-VMEM budget: double-buffered I/O blocks, single-buffered
    # slabs, activation slack; clamped to a range that fits v5e's default and
    # stays well inside v7x's 64 MiB physical VMEM.
    f32 = 4
    io_bytes = 2 * f32 * (T_obs * bblk * (D + 1) + T_unobs * bblk * (1 + F)
                          + T_unobs * bblk * F)
    slab_bytes = f32 * int(slab_a.size + slab_b.size + slab_bias.size + wh1.size)
    act_bytes = f32 * (T_obs * bblk * (6 * H + D + 1)
                       + T_unobs * bblk * (3 * H + F))
    vmem_limit = int(min(max(2 * (io_bytes + slab_bytes + act_bytes),
                             16 * 1024 * 1024), 40 * 1024 * 1024))

    return pl.pallas_call(
        functools.partial(_rnn_cnp_kernel, t_scale=float(t_scale)),
        out_shape=jax.ShapeDtypeStruct((T_unobs, B, F), jnp.float32),
        grid=grid,
        in_specs=in_specs,
        out_specs=out_specs,
        compiler_params=pltpu.CompilerParams(
            dimension_semantics=("parallel",),
            vmem_limit_bytes=vmem_limit),
    )(ts_obs, x_obs, ts_unobs, slab_a, slab_b, slab_bias, wh1)


# ----------------------------------------------------------------------------
# parameter init (PyTorch-default-style), pure-JAX reference, demo
# ----------------------------------------------------------------------------
def _uniform(key, shape, fan_in):
    bound = 1.0 / float(fan_in) ** 0.5
    return jax.random.uniform(key, shape, jnp.float32, -bound, bound)


def init_params(key, input_dim, target_dim, hidden_dim):
    """Deterministic PyTorch-default-style init. Weights stored transposed (in, out)."""
    H = hidden_dim
    ks = iter(jax.random.split(key, 64))
    p = {}
    # input2hidden MLP: (input_dim + 1) -> H -> H
    p["wi0"] = _uniform(next(ks), (input_dim + 1, H), input_dim + 1)
    p["bi0"] = _uniform(next(ks), (1, H), input_dim + 1)
    p["wi1"] = _uniform(next(ks), (H, H), H)
    p["bi1"] = _uniform(next(ks), (1, H), H)
    # 2-layer GRU encoder
    for name in ("g0", "g1"):
        p[f"{name}_wih"] = _uniform(next(ks), (H, 3 * H), H)
        p[f"{name}_whh"] = _uniform(next(ks), (H, 3 * H), H)
        p[f"{name}_bih"] = _uniform(next(ks), (1, 3 * H), H)
        p[f"{name}_bhh"] = _uniform(next(ks), (1, 3 * H), H)
    # aggregation MLP (n_agg_layers = 1)
    p["wa"] = _uniform(next(ks), (H, H), H)
    p["ba"] = _uniform(next(ks), (1, H), H)
    # target2hidden MLP: 1 -> H -> H
    p["wt0"] = _uniform(next(ks), (1, H), 1)
    p["bt0"] = _uniform(next(ks), (1, H), 1)
    p["wt1"] = _uniform(next(ks), (H, H), H)
    p["bt1"] = _uniform(next(ks), (1, H), H)
    # head MLP: concat(target_hidden, z) (2H) -> H -> 2*target_dim
    p["wh0"] = _uniform(next(ks), (2 * H, H), 2 * H)
    p["bh0"] = _uniform(next(ks), (1, H), 2 * H)
    p["wh1"] = _uniform(next(ks), (H, 2 * target_dim), H)
    p["bh1"] = _uniform(next(ks), (1, 2 * target_dim), H)
    return p


def _reference_forward(x_obs, ts_obs, ts_unobs, p, t_scale):
    """Pure-JAX reference implementing exactly the same reconstructed math."""
    T_obs, B, D = x_obs.shape
    T_unobs = ts_unobs.shape[0]
    H = p["wi1"].shape[0]
    inv = 1.0 / t_scale
    t0 = ts_obs[0]
    ts_o = (ts_obs - t0) * inv
    ts_u = (ts_unobs - t0) * inv
    wi0_x, wi0_t = p["wi0"][:D], p["wi0"][D:D + 1]
    wh0_t, wh0_z = p["wh0"][:H], p["wh0"][H:]

    def gru(x, h, wih, whh, bih, bhh):
        gi = x @ wih + bih
        gh = h @ whh + bhh
        r = jax.nn.sigmoid(gi[:, :H] + gh[:, :H])
        z = jax.nn.sigmoid(gi[:, H:2 * H] + gh[:, H:2 * H])
        n = jnp.tanh(gi[:, 2 * H:] + r * gh[:, 2 * H:])
        return (1.0 - z) * n + z * h

    h0 = jnp.zeros((B, H), jnp.float32)
    h1 = jnp.zeros((B, H), jnp.float32)
    for t in range(T_obs):
        e = _leaky_relu(x_obs[t] @ wi0_x + ts_o[t] * wi0_t + p["bi0"])
        e = _leaky_relu(e @ p["wi1"] + p["bi1"])
        h0 = gru(e, h0, p["g0_wih"], p["g0_whh"], p["g0_bih"], p["g0_bhh"])
        h1 = gru(h0, h1, p["g1_wih"], p["g1_whh"], p["g1_bih"], p["g1_bhh"])
    zrep = _leaky_relu(h1 @ p["wa"] + p["ba"])
    z_plus = zrep @ wh0_z + p["bh0"]
    outs = []
    for u in range(T_unobs):
        th = _leaky_relu(ts_u[u] * p["wt0"] + p["bt0"])
        th = _leaky_relu(th @ p["wt1"] + p["bt1"])
        hh = _leaky_relu(th @ wh0_t + z_plus)
        outs.append(hh @ p["wh1"] + p["bh1"])
    return jnp.stack(outs, axis=0)


if __name__ == "__main__":
    input_dim, target_dim, hidden_dim = 4, 4, 8
    B, T_obs, T_unobs = 2, 8, 4
    t_scale = 5.0

    key = jax.random.PRNGKey(0)
    k_x, k_p = jax.random.split(key)

    x_obs = jax.random.normal(k_x, (T_obs, B, input_dim), jnp.float32)
    ts_obs = (jnp.arange(T_obs, dtype=jnp.float32).reshape(T_obs, 1, 1)
              * jnp.ones((1, B, 1), jnp.float32))
    ts_unobs = ((T_obs + jnp.arange(T_unobs, dtype=jnp.float32)).reshape(T_unobs, 1, 1)
                * jnp.ones((1, B, 1), jnp.float32))
    metadata = {}

    params = init_params(k_p, input_dim, target_dim, hidden_dim)
    packed = pack_params(params)     # pack once; reuse across forward calls

    out = baseline_rnn_cnp_forward(x_obs, ts_obs, ts_unobs, packed, metadata,
                                   t_scale=t_scale)
    jax.block_until_ready(out)

    ref = _reference_forward(x_obs, ts_obs, ts_unobs, params, t_scale)
    assert out.shape == (T_unobs, B, 2 * target_dim)
    assert bool(jnp.all(jnp.isfinite(out)))
    max_err = float(jnp.max(jnp.abs(out - ref)))
    assert max_err < 1e-4, f"mismatch vs pure-JAX reference: {max_err}"
    print("KERNEL_OK")
</pallas_src>

<mosaic_0001>
module attributes {stable_mosaic.version = 11 : i64} {
  func.func @_rnn_cnp_kernel(%arg0: i32, %arg1: memref<8x2x1xf32, #tpu.memory_space<vmem>>, %arg2: memref<8x2x4xf32, #tpu.memory_space<vmem>>, %arg3: memref<4x2x1xf32, #tpu.memory_space<vmem>>, %arg4: memref<64x8xf32, #tpu.memory_space<vmem>>, %arg5: memref<32x24xf32, #tpu.memory_space<vmem>>, %arg6: memref<11x24xf32, #tpu.memory_space<vmem>>, %arg7: memref<8x8xf32, #tpu.memory_space<vmem>>, %arg8: memref<4x2x8xf32, #tpu.memory_space<vmem>>) attributes {dimension_semantics = [#tpu.dimension_semantics<parallel>], iteration_bounds = array<i64: 1>, scalar_prefetch = 0 : i64, scratch_operands = 0 : i64, tpu.core_type = #tpu.core_type<tc>, window_params = [{transform_indices = @transform_0, window_bounds = array<i64: 8, 2, 1>}, {transform_indices = @transform_1, window_bounds = array<i64: 8, 2, 4>}, {transform_indices = @transform_2, window_bounds = array<i64: 4, 2, 1>}, {pipeline_mode = #tpu.pipeline_mode<synchronous>, transform_indices = @transform_3, window_bounds = array<i64: 64, 8>}, {pipeline_mode = #tpu.pipeline_mode<synchronous>, transform_indices = @transform_4, window_bounds = array<i64: 32, 24>}, {pipeline_mode = #tpu.pipeline_mode<synchronous>, transform_indices = @transform_5, window_bounds = array<i64: 11, 24>}, {pipeline_mode = #tpu.pipeline_mode<synchronous>, transform_indices = @transform_6, window_bounds = array<i64: 8, 8>}, {transform_indices = @transform_7, window_bounds = array<i64: 4, 2, 8>}]} {
    %c0 = arith.constant 0 : index
    %c0_0 = arith.constant 0 : index
    %0 = vector.load %arg4[%c0, %c0_0] : memref<64x8xf32, #tpu.memory_space<vmem>>, vector<64x8xf32>
    %c0_1 = arith.constant 0 : index
    %c0_2 = arith.constant 0 : index
    %1 = vector.load %arg5[%c0_1, %c0_2] : memref<32x24xf32, #tpu.memory_space<vmem>>, vector<32x24xf32>
    %c0_3 = arith.constant 0 : index
    %c0_4 = arith.constant 0 : index
    %2 = vector.load %arg6[%c0_3, %c0_4] : memref<11x24xf32, #tpu.memory_space<vmem>>, vector<11x24xf32>
    %3 = vector.extract_strided_slice %0 {offsets = [0, 0], sizes = [4, 8], strides = [1, 1]} : vector<64x8xf32> to vector<4x8xf32>
    %4 = vector.extract_strided_slice %0 {offsets = [8, 0], sizes = [1, 8], strides = [1, 1]} : vector<64x8xf32> to vector<1x8xf32>
    %5 = vector.extract_strided_slice %0 {offsets = [16, 0], sizes = [8, 8], strides = [1, 1]} : vector<64x8xf32> to vector<8x8xf32>
    %6 = vector.extract_strided_slice %0 {offsets = [24, 0], sizes = [8, 8], strides = [1, 1]} : vector<64x8xf32> to vector<8x8xf32>
    %7 = vector.extract_strided_slice %0 {offsets = [32, 0], sizes = [1, 8], strides = [1, 1]} : vector<64x8xf32> to vector<1x8xf32>
    %8 = vector.extract_strided_slice %0 {offsets = [40, 0], sizes = [8, 8], strides = [1, 1]} : vector<64x8xf32> to vector<8x8xf32>
    %9 = vector.extract_strided_slice %0 {offsets = [48, 0], sizes = [8, 8], strides = [1, 1]} : vector<64x8xf32> to vector<8x8xf32>
    %10 = vector.extract_strided_slice %0 {offsets = [56, 0], sizes = [8, 8], strides = [1, 1]} : vector<64x8xf32> to vector<8x8xf32>
    %c0_5 = arith.constant 0 : index
    %c0_6 = arith.constant 0 : index
    %11 = vector.load %arg7[%c0_5, %c0_6] : memref<8x8xf32, #tpu.memory_space<vmem>>, vector<8x8xf32>
    %12 = vector.extract_strided_slice %1 {offsets = [0, 0], sizes = [8, 24], strides = [1, 1]} : vector<32x24xf32> to vector<8x24xf32>
    %13 = vector.extract_strided_slice %1 {offsets = [8, 0], sizes = [8, 24], strides = [1, 1]} : vector<32x24xf32> to vector<8x24xf32>
    %14 = vector.extract_strided_slice %1 {offsets = [16, 0], sizes = [8, 24], strides = [1, 1]} : vector<32x24xf32> to vector<8x24xf32>
    %15 = vector.extract_strided_slice %1 {offsets = [24, 0], sizes = [8, 24], strides = [1, 1]} : vector<32x24xf32> to vector<8x24xf32>
    %16 = vector.extract_strided_slice %2 {offsets = [0, 0], sizes = [1, 8], strides = [1, 1]} : vector<11x24xf32> to vector<1x8xf32>
    %17 = vector.extract_strided_slice %2 {offsets = [1, 0], sizes = [1, 8], strides = [1, 1]} : vector<11x24xf32> to vector<1x8xf32>
    %18 = vector.extract_strided_slice %2 {offsets = [6, 0], sizes = [1, 8], strides = [1, 1]} : vector<11x24xf32> to vector<1x8xf32>
    %19 = vector.extract_strided_slice %2 {offsets = [7, 0], sizes = [1, 8], strides = [1, 1]} : vector<11x24xf32> to vector<1x8xf32>
    %20 = vector.extract_strided_slice %2 {offsets = [8, 0], sizes = [1, 8], strides = [1, 1]} : vector<11x24xf32> to vector<1x8xf32>
    %21 = vector.extract_strided_slice %2 {offsets = [9, 0], sizes = [1, 8], strides = [1, 1]} : vector<11x24xf32> to vector<1x8xf32>
    %22 = vector.extract_strided_slice %2 {offsets = [10, 0], sizes = [1, 8], strides = [1, 1]} : vector<11x24xf32> to vector<1x8xf32>
    %23 = vector.extract_strided_slice %2 {offsets = [2, 0], sizes = [1, 24], strides = [1, 1]} : vector<11x24xf32> to vector<1x24xf32>
    %24 = vector.extract_strided_slice %2 {offsets = [3, 0], sizes = [1, 24], strides = [1, 1]} : vector<11x24xf32> to vector<1x24xf32>
    %25 = vector.shape_cast %24 : vector<1x24xf32> to vector<1x24xf32>
    %26 = vector.broadcast %25 : vector<1x24xf32> to vector<2x24xf32>
    %27 = vector.extract_strided_slice %2 {offsets = [4, 0], sizes = [1, 24], strides = [1, 1]} : vector<11x24xf32> to vector<1x24xf32>
    %28 = vector.shape_cast %27 : vector<1x24xf32> to vector<1x24xf32>
    %29 = vector.broadcast %28 : vector<1x24xf32> to vector<2x24xf32>
    %30 = vector.extract_strided_slice %2 {offsets = [5, 0], sizes = [1, 24], strides = [1, 1]} : vector<11x24xf32> to vector<1x24xf32>
    %31 = vector.shape_cast %30 : vector<1x24xf32> to vector<1x24xf32>
    %32 = vector.broadcast %31 : vector<1x24xf32> to vector<2x24xf32>
    %c0_7 = arith.constant 0 : index
    %c0_8 = arith.constant 0 : index
    %c0_9 = arith.constant 0 : index
    %33 = vector.load %arg1[%c0_7, %c0_8, %c0_9] : memref<8x2x1xf32, #tpu.memory_space<vmem>>, vector<1x2x1xf32>
    %34 = vector.shape_cast %33 : vector<1x2x1xf32> to vector<2x1xf32>
    %c0_10 = arith.constant 0 : index
    %c0_11 = arith.constant 0 : index
    %c0_12 = arith.constant 0 : index
    %35 = vector.load %arg1[%c0_10, %c0_11, %c0_12] : memref<8x2x1xf32, #tpu.memory_space<vmem>>, vector<8x2x1xf32>
    %36 = vector.shape_cast %34 : vector<2x1xf32> to vector<1x2x1xf32>
    %37 = vector.broadcast %36 : vector<1x2x1xf32> to vector<8x2x1xf32>
    %38 = arith.subf %35, %37 : vector<8x2x1xf32>
    %cst = arith.constant 2.000000e-01 : f32
    %39 = vector.broadcast %cst : f32 to vector<8x2x1xf32>
    %40 = arith.mulf %38, %39 : vector<8x2x1xf32>
    %41 = vector.shape_cast %40 : vector<8x2x1xf32> to vector<16x1xf32>
    %c0_13 = arith.constant 0 : index
    %c0_14 = arith.constant 0 : index
    %c0_15 = arith.constant 0 : index
    %42 = vector.load %arg2[%c0_13, %c0_14, %c0_15] : memref<8x2x4xf32, #tpu.memory_space<vmem>>, vector<8x2x4xf32>
    %43 = vector.shape_cast %42 : vector<8x2x4xf32> to vector<16x4xf32>
    %cst_16 = arith.constant dense<0.000000e+00> : vector<16x8xf32>
    %44 = tpu.matmul %43, %3, %cst_16 {dimension_numbers = #tpu.dot_dimension_numbers<[1], [0], [0], [1], [0, 0, 1, 1], [], []>} : vector<16x4xf32>, vector<4x8xf32>, vector<16x8xf32> -> vector<16x8xf32>
    %45 = vector.broadcast %41 : vector<16x1xf32> to vector<16x8xf32>
    %46 = vector.broadcast %4 : vector<1x8xf32> to vector<16x8xf32>
    %47 = arith.mulf %45, %46 : vector<16x8xf32>
    %48 = arith.addf %44, %47 : vector<16x8xf32>
    %49 = vector.broadcast %16 : vector<1x8xf32> to vector<16x8xf32>
    %50 = arith.addf %48, %49 : vector<16x8xf32>
    %cst_17 = arith.constant 1.000000e-01 : f32
    %51 = vector.broadcast %cst_17 : f32 to vector<16x8xf32>
    %52 = arith.mulf %51, %50 : vector<16x8xf32>
    %53 = arith.maximumf %50, %52 : vector<16x8xf32>
    %cst_18 = arith.constant dense<0.000000e+00> : vector<16x8xf32>
    %54 = tpu.matmul %53, %5, %cst_18 {dimension_numbers = #tpu.dot_dimension_numbers<[1], [0], [0], [1], [0, 0, 1, 1], [], []>} : vector<16x8xf32>, vector<8x8xf32>, vector<16x8xf32> -> vector<16x8xf32>
    %55 = vector.broadcast %17 : vector<1x8xf32> to vector<16x8xf32>
    %56 = arith.addf %54, %55 : vector<16x8xf32>
    %cst_19 = arith.constant 1.000000e-01 : f32
    %57 = vector.broadcast %cst_19 : f32 to vector<16x8xf32>
    %58 = arith.mulf %57, %56 : vector<16x8xf32>
    %59 = arith.maximumf %56, %58 : vector<16x8xf32>
    %cst_20 = arith.constant dense<0.000000e+00> : vector<16x24xf32>
    %60 = tpu.matmul %59, %12, %cst_20 {dimension_numbers = #tpu.dot_dimension_numbers<[1], [0], [0], [1], [0, 0, 1, 1], [], []>} : vector<16x8xf32>, vector<8x24xf32>, vector<16x24xf32> -> vector<16x24xf32>
    %61 = vector.broadcast %23 : vector<1x24xf32> to vector<16x24xf32>
    %62 = arith.addf %60, %61 : vector<16x24xf32>
    %cst_21 = arith.constant 0.000000e+00 : f32
    %63 = vector.broadcast %cst_21 : f32 to vector<2x8xf32>
    %cst_22 = arith.constant 0.000000e+00 : f32
    %64 = vector.broadcast %cst_22 : f32 to vector<2x8xf32>
    %65 = vector.extract_strided_slice %62 {offsets = [0, 0], sizes = [2, 24], strides = [1, 1]} : vector<16x24xf32> to vector<2x24xf32>
    %cst_23 = arith.constant dense<0.000000e+00> : vector<2x24xf32>
    %66 = tpu.matmul %63, %13, %cst_23 {dimension_numbers = #tpu.dot_dimension_numbers<[1], [0], [0], [1], [0, 0, 1, 1], [], []>} : vector<2x8xf32>, vector<8x24xf32>, vector<2x24xf32> -> vector<2x24xf32>
    %67 = arith.addf %66, %26 : vector<2x24xf32>
    %68 = vector.extract_strided_slice %65 {offsets = [0, 0], sizes = [2, 8], strides = [1, 1]} : vector<2x24xf32> to vector<2x8xf32>
    %69 = vector.extract_strided_slice %67 {offsets = [0, 0], sizes = [2, 8], strides = [1, 1]} : vector<2x24xf32> to vector<2x8xf32>
    %70 = arith.addf %68, %69 : vector<2x8xf32>
    %71 = arith.negf %70 : vector<2x8xf32>
    %72 = math.exp %71 : vector<2x8xf32>
    %cst_24 = arith.constant 1.000000e+00 : f32
    %73 = vector.broadcast %cst_24 : f32 to vector<2x8xf32>
    %74 = arith.addf %73, %72 : vector<2x8xf32>
    %75 = arith.divf %73, %74 : vector<2x8xf32>
    %76 = vector.extract_strided_slice %65 {offsets = [0, 8], sizes = [2, 8], strides = [1, 1]} : vector<2x24xf32> to vector<2x8xf32>
    %77 = vector.extract_strided_slice %67 {offsets = [0, 8], sizes = [2, 8], strides = [1, 1]} : vector<2x24xf32> to vector<2x8xf32>
    %78 = arith.addf %76, %77 : vector<2x8xf32>
    %79 = arith.negf %78 : vector<2x8xf32>
    %80 = math.exp %79 : vector<2x8xf32>
    %cst_25 = arith.constant 1.000000e+00 : f32
    %81 = vector.broadcast %cst_25 : f32 to vector<2x8xf32>
    %82 = arith.addf %81, %80 : vector<2x8xf32>
    %83 = arith.divf %81, %82 : vector<2x8xf32>
    %84 = vector.extract_strided_slice %65 {offsets = [0, 16], sizes = [2, 8], strides = [1, 1]} : vector<2x24xf32> to vector<2x8xf32>
    %85 = vector.extract_strided_slice %67 {offsets = [0, 16], sizes = [2, 8], strides = [1, 1]} : vector<2x24xf32> to vector<2x8xf32>
    %86 = arith.mulf %75, %85 : vector<2x8xf32>
    %87 = arith.addf %84, %86 : vector<2x8xf32>
    %88 = math.tanh %87 : vector<2x8xf32>
    %cst_26 = arith.constant 1.000000e+00 : f32
    %89 = vector.broadcast %cst_26 : f32 to vector<2x8xf32>
    %90 = arith.subf %89, %83 : vector<2x8xf32>
    %91 = arith.mulf %90, %88 : vector<2x8xf32>
    %92 = arith.mulf %83, %63 : vector<2x8xf32>
    %93 = arith.addf %91, %92 : vector<2x8xf32>
    %cst_27 = arith.constant dense<0.000000e+00> : vector<2x24xf32>
    %94 = tpu.matmul %93, %14, %cst_27 {dimension_numbers = #tpu.dot_dimension_numbers<[1], [0], [0], [1], [0, 0, 1, 1], [], []>} : vector<2x8xf32>, vector<8x24xf32>, vector<2x24xf32> -> vector<2x24xf32>
    %95 = arith.addf %94, %29 : vector<2x24xf32>
    %cst_28 = arith.constant dense<0.000000e+00> : vector<2x24xf32>
    %96 = tpu.matmul %64, %15, %cst_28 {dimension_numbers = #tpu.dot_dimension_numbers<[1], [0], [0], [1], [0, 0, 1, 1], [], []>} : vector<2x8xf32>, vector<8x24xf32>, vector<2x24xf32> -> vector<2x24xf32>
    %97 = arith.addf %96, %32 : vector<2x24xf32>
    %98 = vector.extract_strided_slice %95 {offsets = [0, 0], sizes = [2, 8], strides = [1, 1]} : vector<2x24xf32> to vector<2x8xf32>
    %99 = vector.extract_strided_slice %97 {offsets = [0, 0], sizes = [2, 8], strides = [1, 1]} : vector<2x24xf32> to vector<2x8xf32>
    %100 = arith.addf %98, %99 : vector<2x8xf32>
    %101 = arith.negf %100 : vector<2x8xf32>
    %102 = math.exp %101 : vector<2x8xf32>
    %cst_29 = arith.constant 1.000000e+00 : f32
    %103 = vector.broadcast %cst_29 : f32 to vector<2x8xf32>
    %104 = arith.addf %103, %102 : vector<2x8xf32>
    %105 = arith.divf %103, %104 : vector<2x8xf32>
    %106 = vector.extract_strided_slice %95 {offsets = [0, 8], sizes = [2, 8], strides = [1, 1]} : vector<2x24xf32> to vector<2x8xf32>
    %107 = vector.extract_strided_slice %97 {offsets = [0, 8], sizes = [2, 8], strides = [1, 1]} : vector<2x24xf32> to vector<2x8xf32>
    %108 = arith.addf %106, %107 : vector<2x8xf32>
    %109 = arith.negf %108 : vector<2x8xf32>
    %110 = math.exp %109 : vector<2x8xf32>
    %cst_30 = arith.constant 1.000000e+00 : f32
    %111 = vector.broadcast %cst_30 : f32 to vector<2x8xf32>
    %112 = arith.addf %111, %110 : vector<2x8xf32>
    %113 = arith.divf %111, %112 : vector<2x8xf32>
    %114 = vector.extract_strided_slice %95 {offsets = [0, 16], sizes = [2, 8], strides = [1, 1]} : vector<2x24xf32> to vector<2x8xf32>
    %115 = vector.extract_strided_slice %97 {offsets = [0, 16], sizes = [2, 8], strides = [1, 1]} : vector<2x24xf32> to vector<2x8xf32>
    %116 = arith.mulf %105, %115 : vector<2x8xf32>
    %117 = arith.addf %114, %116 : vector<2x8xf32>
    %118 = math.tanh %117 : vector<2x8xf32>
    %cst_31 = arith.constant 1.000000e+00 : f32
    %119 = vector.broadcast %cst_31 : f32 to vector<2x8xf32>
    %120 = arith.subf %119, %113 : vector<2x8xf32>
    %121 = arith.mulf %120, %118 : vector<2x8xf32>
    %122 = arith.mulf %113, %64 : vector<2x8xf32>
    %123 = arith.addf %121, %122 : vector<2x8xf32>
    %124 = vector.extract_strided_slice %62 {offsets = [2, 0], sizes = [2, 24], strides = [1, 1]} : vector<16x24xf32> to vector<2x24xf32>
    %cst_32 = arith.constant dense<0.000000e+00> : vector<2x24xf32>
    %125 = tpu.matmul %93, %13, %cst_32 {dimension_numbers = #tpu.dot_dimension_numbers<[1], [0], [0], [1], [0, 0, 1, 1], [], []>} : vector<2x8xf32>, vector<8x24xf32>, vector<2x24xf32> -> vector<2x24xf32>
    %126 = arith.addf %125, %26 : vector<2x24xf32>
    %127 = vector.extract_strided_slice %124 {offsets = [0, 0], sizes = [2, 8], strides = [1, 1]} : vector<2x24xf32> to vector<2x8xf32>
    %128 = vector.extract_strided_slice %126 {offsets = [0, 0], sizes = [2, 8], strides = [1, 1]} : vector<2x24xf32> to vector<2x8xf32>
    %129 = arith.addf %127, %128 : vector<2x8xf32>
    %130 = arith.negf %129 : vector<2x8xf32>
    %131 = math.exp %130 : vector<2x8xf32>
    %cst_33 = arith.constant 1.000000e+00 : f32
    %132 = vector.broadcast %cst_33 : f32 to vector<2x8xf32>
    %133 = arith.addf %132, %131 : vector<2x8xf32>
    %134 = arith.divf %132, %133 : vector<2x8xf32>
    %135 = vector.extract_strided_slice %124 {offsets = [0, 8], sizes = [2, 8], strides = [1, 1]} : vector<2x24xf32> to vector<2x8xf32>
    %136 = vector.extract_strided_slice %126 {offsets = [0, 8], sizes = [2, 8], strides = [1, 1]} : vector<2x24xf32> to vector<2x8xf32>
    %137 = arith.addf %135, %136 : vector<2x8xf32>
    %138 = arith.negf %137 : vector<2x8xf32>
    %139 = math.exp %138 : vector<2x8xf32>
    %cst_34 = arith.constant 1.000000e+00 : f32
    %140 = vector.broadcast %cst_34 : f32 to vector<2x8xf32>
    %141 = arith.addf %140, %139 : vector<2x8xf32>
    %142 = arith.divf %140, %141 : vector<2x8xf32>
    %143 = vector.extract_strided_slice %124 {offsets = [0, 16], sizes = [2, 8], strides = [1, 1]} : vector<2x24xf32> to vector<2x8xf32>
    %144 = vector.extract_strided_slice %126 {offsets = [0, 16], sizes = [2, 8], strides = [1, 1]} : vector<2x24xf32> to vector<2x8xf32>
    %145 = arith.mulf %134, %144 : vector<2x8xf32>
    %146 = arith.addf %143, %145 : vector<2x8xf32>
    %147 = math.tanh %146 : vector<2x8xf32>
    %cst_35 = arith.constant 1.000000e+00 : f32
    %148 = vector.broadcast %cst_35 : f32 to vector<2x8xf32>
    %149 = arith.subf %148, %142 : vector<2x8xf32>
    %150 = arith.mulf %149, %147 : vector<2x8xf32>
    %151 = arith.mulf %142, %93 : vector<2x8xf32>
    %152 = arith.addf %150, %151 : vector<2x8xf32>
    %cst_36 = arith.constant dense<0.000000e+00> : vector<2x24xf32>
    %153 = tpu.matmul %152, %14, %cst_36 {dimension_numbers = #tpu.dot_dimension_numbers<[1], [0], [0], [1], [0, 0, 1, 1], [], []>} : vector<2x8xf32>, vector<8x24xf32>, vector<2x24xf32> -> vector<2x24xf32>
    %154 = arith.addf %153, %29 : vector<2x24xf32>
    %cst_37 = arith.constant dense<0.000000e+00> : vector<2x24xf32>
    %155 = tpu.matmul %123, %15, %cst_37 {dimension_numbers = #tpu.dot_dimension_numbers<[1], [0], [0], [1], [0, 0, 1, 1], [], []>} : vector<2x8xf32>, vector<8x24xf32>, vector<2x24xf32> -> vector<2x24xf32>
    %156 = arith.addf %155, %32 : vector<2x24xf32>
    %157 = vector.extract_strided_slice %154 {offsets = [0, 0], sizes = [2, 8], strides = [1, 1]} : vector<2x24xf32> to vector<2x8xf32>
    %158 = vector.extract_strided_slice %156 {offsets = [0, 0], sizes = [2, 8], strides = [1, 1]} : vector<2x24xf32> to vector<2x8xf32>
    %159 = arith.addf %157, %158 : vector<2x8xf32>
    %160 = arith.negf %159 : vector<2x8xf32>
    %161 = math.exp %160 : vector<2x8xf32>
    %cst_38 = arith.constant 1.000000e+00 : f32
    %162 = vector.broadcast %cst_38 : f32 to vector<2x8xf32>
    %163 = arith.addf %162, %161 : vector<2x8xf32>
    %164 = arith.divf %162, %163 : vector<2x8xf32>
    %165 = vector.extract_strided_slice %154 {offsets = [0, 8], sizes = [2, 8], strides = [1, 1]} : vector<2x24xf32> to vector<2x8xf32>
    %166 = vector.extract_strided_slice %156 {offsets = [0, 8], sizes = [2, 8], strides = [1, 1]} : vector<2x24xf32> to vector<2x8xf32>
    %167 = arith.addf %165, %166 : vector<2x8xf32>
    %168 = arith.negf %167 : vector<2x8xf32>
    %169 = math.exp %168 : vector<2x8xf32>
    %cst_39 = arith.constant 1.000000e+00 : f32
    %170 = vector.broadcast %cst_39 : f32 to vector<2x8xf32>
    %171 = arith.addf %170, %169 : vector<2x8xf32>
    %172 = arith.divf %170, %171 : vector<2x8xf32>
    %173 = vector.extract_strided_slice %154 {offsets = [0, 16], sizes = [2, 8], strides = [1, 1]} : vector<2x24xf32> to vector<2x8xf32>
    %174 = vector.extract_strided_slice %156 {offsets = [0, 16], sizes = [2, 8], strides = [1, 1]} : vector<2x24xf32> to vector<2x8xf32>
    %175 = arith.mulf %164, %174 : vector<2x8xf32>
    %176 = arith.addf %173, %175 : vector<2x8xf32>
    %177 = math.tanh %176 : vector<2x8xf32>
    %cst_40 = arith.constant 1.000000e+00 : f32
    %178 = vector.broadcast %cst_40 : f32 to vector<2x8xf32>
    %179 = arith.subf %178, %172 : vector<2x8xf32>
    %180 = arith.mulf %179, %177 : vector<2x8xf32>
    %181 = arith.mulf %172, %123 : vector<2x8xf32>
    %182 = arith.addf %180, %181 : vector<2x8xf32>
    %183 = vector.extract_strided_slice %62 {offsets = [4, 0], sizes = [2, 24], strides = [1, 1]} : vector<16x24xf32> to vector<2x24xf32>
    %cst_41 = arith.constant dense<0.000000e+00> : vector<2x24xf32>
    %184 = tpu.matmul %152, %13, %cst_41 {dimension_numbers = #tpu.dot_dimension_numbers<[1], [0], [0], [1], [0, 0, 1, 1], [], []>} : vector<2x8xf32>, vector<8x24xf32>, vector<2x24xf32> -> vector<2x24xf32>
    %185 = arith.addf %184, %26 : vector<2x24xf32>
    %186 = vector.extract_strided_slice %183 {offsets = [0, 0], sizes = [2, 8], strides = [1, 1]} : vector<2x24xf32> to vector<2x8xf32>
    %187 = vector.extract_strided_slice %185 {offsets = [0, 0], sizes = [2, 8], strides = [1, 1]} : vector<2x24xf32> to vector<2x8xf32>
    %188 = arith.addf %186, %187 : vector<2x8xf32>
    %189 = arith.negf %188 : vector<2x8xf32>
    %190 = math.exp %189 : vector<2x8xf32>
    %cst_42 = arith.constant 1.000000e+00 : f32
    %191 = vector.broadcast %cst_42 : f32 to vector<2x8xf32>
    %192 = arith.addf %191, %190 : vector<2x8xf32>
    %193 = arith.divf %191, %192 : vector<2x8xf32>
    %194 = vector.extract_strided_slice %183 {offsets = [0, 8], sizes = [2, 8], strides = [1, 1]} : vector<2x24xf32> to vector<2x8xf32>
    %195 = vector.extract_strided_slice %185 {offsets = [0, 8], sizes = [2, 8], strides = [1, 1]} : vector<2x24xf32> to vector<2x8xf32>
    %196 = arith.addf %194, %195 : vector<2x8xf32>
    %197 = arith.negf %196 : vector<2x8xf32>
    %198 = math.exp %197 : vector<2x8xf32>
    %cst_43 = arith.constant 1.000000e+00 : f32
    %199 = vector.broadcast %cst_43 : f32 to vector<2x8xf32>
    %200 = arith.addf %199, %198 : vector<2x8xf32>
    %201 = arith.divf %199, %200 : vector<2x8xf32>
    %202 = vector.extract_strided_slice %183 {offsets = [0, 16], sizes = [2, 8], strides = [1, 1]} : vector<2x24xf32> to vector<2x8xf32>
    %203 = vector.extract_strided_slice %185 {offsets = [0, 16], sizes = [2, 8], strides = [1, 1]} : vector<2x24xf32> to vector<2x8xf32>
    %204 = arith.mulf %193, %203 : vector<2x8xf32>
    %205 = arith.addf %202, %204 : vector<2x8xf32>
    %206 = math.tanh %205 : vector<2x8xf32>
    %cst_44 = arith.constant 1.000000e+00 : f32
    %207 = vector.broadcast %cst_44 : f32 to vector<2x8xf32>
    %208 = arith.subf %207, %201 : vector<2x8xf32>
    %209 = arith.mulf %208, %206 : vector<2x8xf32>
    %210 = arith.mulf %201, %152 : vector<2x8xf32>
    %211 = arith.addf %209, %210 : vector<2x8xf32>
    %cst_45 = arith.constant dense<0.000000e+00> : vector<2x24xf32>
    %212 = tpu.matmul %211, %14, %cst_45 {dimension_numbers = #tpu.dot_dimension_numbers<[1], [0], [0], [1], [0, 0, 1, 1], [], []>} : vector<2x8xf32>, vector<8x24xf32>, vector<2x24xf32> -> vector<2x24xf32>
    %213 = arith.addf %212, %29 : vector<2x24xf32>
    %cst_46 = arith.constant dense<0.000000e+00> : vector<2x24xf32>
    %214 = tpu.matmul %182, %15, %cst_46 {dimension_numbers = #tpu.dot_dimension_numbers<[1], [0], [0], [1], [0, 0, 1, 1], [], []>} : vector<2x8xf32>, vector<8x24xf32>, vector<2x24xf32> -> vector<2x24xf32>
    %215 = arith.addf %214, %32 : vector<2x24xf32>
    %216 = vector.extract_strided_slice %213 {offsets = [0, 0], sizes = [2, 8], strides = [1, 1]} : vector<2x24xf32> to vector<2x8xf32>
    %217 = vector.extract_strided_slice %215 {offsets = [0, 0], sizes = [2, 8], strides = [1, 1]} : vector<2x24xf32> to vector<2x8xf32>
    %218 = arith.addf %216, %217 : vector<2x8xf32>
    %219 = arith.negf %218 : vector<2x8xf32>
    %220 = math.exp %219 : vector<2x8xf32>
    %cst_47 = arith.constant 1.000000e+00 : f32
    %221 = vector.broadcast %cst_47 : f32 to vector<2x8xf32>
    %222 = arith.addf %221, %220 : vector<2x8xf32>
    %223 = arith.divf %221, %222 : vector<2x8xf32>
    %224 = vector.extract_strided_slice %213 {offsets = [0, 8], sizes = [2, 8], strides = [1, 1]} : vector<2x24xf32> to vector<2x8xf32>
    %225 = vector.extract_strided_slice %215 {offsets = [0, 8], sizes = [2, 8], strides = [1, 1]} : vector<2x24xf32> to vector<2x8xf32>
    %226 = arith.addf %224, %225 : vector<2x8xf32>
    %227 = arith.negf %226 : vector<2x8xf32>
    %228 = math.exp %227 : vector<2x8xf32>
    %cst_48 = arith.constant 1.000000e+00 : f32
    %229 = vector.broadcast %cst_48 : f32 to vector<2x8xf32>
    %230 = arith.addf %229, %228 : vector<2x8xf32>
    %231 = arith.divf %229, %230 : vector<2x8xf32>
    %232 = vector.extract_strided_slice %213 {offsets = [0, 16], sizes = [2, 8], strides = [1, 1]} : vector<2x24xf32> to vector<2x8xf32>
    %233 = vector.extract_strided_slice %215 {offsets = [0, 16], sizes = [2, 8], strides = [1, 1]} : vector<2x24xf32> to vector<2x8xf32>
    %234 = arith.mulf %223, %233 : vector<2x8xf32>
    %235 = arith.addf %232, %234 : vector<2x8xf32>
    %236 = math.tanh %235 : vector<2x8xf32>
    %cst_49 = arith.constant 1.000000e+00 : f32
    %237 = vector.broadcast %cst_49 : f32 to vector<2x8xf32>
    %238 = arith.subf %237, %231 : vector<2x8xf32>
    %239 = arith.mulf %238, %236 : vector<2x8xf32>
    %240 = arith.mulf %231, %182 : vector<2x8xf32>
    %241 = arith.addf %239, %240 : vector<2x8xf32>
    %242 = vector.extract_strided_slice %62 {offsets = [6, 0], sizes = [2, 24], strides = [1, 1]} : vector<16x24xf32> to vector<2x24xf32>
    %cst_50 = arith.constant dense<0.000000e+00> : vector<2x24xf32>
    %243 = tpu.matmul %211, %13, %cst_50 {dimension_numbers = #tpu.dot_dimension_numbers<[1], [0], [0], [1], [0, 0, 1, 1], [], []>} : vector<2x8xf32>, vector<8x24xf32>, vector<2x24xf32> -> vector<2x24xf32>
    %244 = arith.addf %243, %26 : vector<2x24xf32>
    %245 = vector.extract_strided_slice %242 {offsets = [0, 0], sizes = [2, 8], strides = [1, 1]} : vector<2x24xf32> to vector<2x8xf32>
    %246 = vector.extract_strided_slice %244 {offsets = [0, 0], sizes = [2, 8], strides = [1, 1]} : vector<2x24xf32> to vector<2x8xf32>
    %247 = arith.addf %245, %246 : vector<2x8xf32>
    %248 = arith.negf %247 : vector<2x8xf32>
    %249 = math.exp %248 : vector<2x8xf32>
    %cst_51 = arith.constant 1.000000e+00 : f32
    %250 = vector.broadcast %cst_51 : f32 to vector<2x8xf32>
    %251 = arith.addf %250, %249 : vector<2x8xf32>
    %252 = arith.divf %250, %251 : vector<2x8xf32>
    %253 = vector.extract_strided_slice %242 {offsets = [0, 8], sizes = [2, 8], strides = [1, 1]} : vector<2x24xf32> to vector<2x8xf32>
    %254 = vector.extract_strided_slice %244 {offsets = [0, 8], sizes = [2, 8], strides = [1, 1]} : vector<2x24xf32> to vector<2x8xf32>
    %255 = arith.addf %253, %254 : vector<2x8xf32>
    %256 = arith.negf %255 : vector<2x8xf32>
    %257 = math.exp %256 : vector<2x8xf32>
    %cst_52 = arith.constant 1.000000e+00 : f32
    %258 = vector.broadcast %cst_52 : f32 to vector<2x8xf32>
    %259 = arith.addf %258, %257 : vector<2x8xf32>
    %260 = arith.divf %258, %259 : vector<2x8xf32>
    %261 = vector.extract_strided_slice %242 {offsets = [0, 16], sizes = [2, 8], strides = [1, 1]} : vector<2x24xf32> to vector<2x8xf32>
    %262 = vector.extract_strided_slice %244 {offsets = [0, 16], sizes = [2, 8], strides = [1, 1]} : vector<2x24xf32> to vector<2x8xf32>
    %263 = arith.mulf %252, %262 : vector<2x8xf32>
    %264 = arith.addf %261, %263 : vector<2x8xf32>
    %265 = math.tanh %264 : vector<2x8xf32>
    %cst_53 = arith.constant 1.000000e+00 : f32
    %266 = vector.broadcast %cst_53 : f32 to vector<2x8xf32>
    %267 = arith.subf %266, %260 : vector<2x8xf32>
    %268 = arith.mulf %267, %265 : vector<2x8xf32>
    %269 = arith.mulf %260, %211 : vector<2x8xf32>
    %270 = arith.addf %268, %269 : vector<2x8xf32>
    %cst_54 = arith.constant dense<0.000000e+00> : vector<2x24xf32>
    %271 = tpu.matmul %270, %14, %cst_54 {dimension_numbers = #tpu.dot_dimension_numbers<[1], [0], [0], [1], [0, 0, 1, 1], [], []>} : vector<2x8xf32>, vector<8x24xf32>, vector<2x24xf32> -> vector<2x24xf32>
    %272 = arith.addf %271, %29 : vector<2x24xf32>
    %cst_55 = arith.constant dense<0.000000e+00> : vector<2x24xf32>
    %273 = tpu.matmul %241, %15, %cst_55 {dimension_numbers = #tpu.dot_dimension_numbers<[1], [0], [0], [1], [0, 0, 1, 1], [], []>} : vector<2x8xf32>, vector<8x24xf32>, vector<2x24xf32> -> vector<2x24xf32>
    %274 = arith.addf %273, %32 : vector<2x24xf32>
    %275 = vector.extract_strided_slice %272 {offsets = [0, 0], sizes = [2, 8], strides = [1, 1]} : vector<2x24xf32> to vector<2x8xf32>
    %276 = vector.extract_strided_slice %274 {offsets = [0, 0], sizes = [2, 8], strides = [1, 1]} : vector<2x24xf32> to vector<2x8xf32>
    %277 = arith.addf %275, %276 : vector<2x8xf32>
    %278 = arith.negf %277 : vector<2x8xf32>
    %279 = math.exp %278 : vector<2x8xf32>
    %cst_56 = arith.constant 1.000000e+00 : f32
    %280 = vector.broadcast %cst_56 : f32 to vector<2x8xf32>
    %281 = arith.addf %280, %279 : vector<2x8xf32>
    %282 = arith.divf %280, %281 : vector<2x8xf32>
    %283 = vector.extract_strided_slice %272 {offsets = [0, 8], sizes = [2, 8], strides = [1, 1]} : vector<2x24xf32> to vector<2x8xf32>
    %284 = vector.extract_strided_slice %274 {offsets = [0, 8], sizes = [2, 8], strides = [1, 1]} : vector<2x24xf32> to vector<2x8xf32>
    %285 = arith.addf %283, %284 : vector<2x8xf32>
    %286 = arith.negf %285 : vector<2x8xf32>
    %287 = math.exp %286 : vector<2x8xf32>
    %cst_57 = arith.constant 1.000000e+00 : f32
    %288 = vector.broadcast %cst_57 : f32 to vector<2x8xf32>
    %289 = arith.addf %288, %287 : vector<2x8xf32>
    %290 = arith.divf %288, %289 : vector<2x8xf32>
    %291 = vector.extract_strided_slice %272 {offsets = [0, 16], sizes = [2, 8], strides = [1, 1]} : vector<2x24xf32> to vector<2x8xf32>
    %292 = vector.extract_strided_slice %274 {offsets = [0, 16], sizes = [2, 8], strides = [1, 1]} : vector<2x24xf32> to vector<2x8xf32>
    %293 = arith.mulf %282, %292 : vector<2x8xf32>
    %294 = arith.addf %291, %293 : vector<2x8xf32>
    %295 = math.tanh %294 : vector<2x8xf32>
    %cst_58 = arith.constant 1.000000e+00 : f32
    %296 = vector.broadcast %cst_58 : f32 to vector<2x8xf32>
    %297 = arith.subf %296, %290 : vector<2x8xf32>
    %298 = arith.mulf %297, %295 : vector<2x8xf32>
    %299 = arith.mulf %290, %241 : vector<2x8xf32>
    %300 = arith.addf %298, %299 : vector<2x8xf32>
    %301 = vector.extract_strided_slice %62 {offsets = [8, 0], sizes = [2, 24], strides = [1, 1]} : vector<16x24xf32> to vector<2x24xf32>
    %cst_59 = arith.constant dense<0.000000e+00> : vector<2x24xf32>
    %302 = tpu.matmul %270, %13, %cst_59 {dimension_numbers = #tpu.dot_dimension_numbers<[1], [0], [0], [1], [0, 0, 1, 1], [], []>} : vector<2x8xf32>, vector<8x24xf32>, vector<2x24xf32> -> vector<2x24xf32>
    %303 = arith.addf %302, %26 : vector<2x24xf32>
    %304 = vector.extract_strided_slice %301 {offsets = [0, 0], sizes = [2, 8], strides = [1, 1]} : vector<2x24xf32> to vector<2x8xf32>
    %305 = vector.extract_strided_slice %303 {offsets = [0, 0], sizes = [2, 8], strides = [1, 1]} : vector<2x24xf32> to vector<2x8xf32>
    %306 = arith.addf %304, %305 : vector<2x8xf32>
    %307 = arith.negf %306 : vector<2x8xf32>
    %308 = math.exp %307 : vector<2x8xf32>
    %cst_60 = arith.constant 1.000000e+00 : f32
    %309 = vector.broadcast %cst_60 : f32 to vector<2x8xf32>
    %310 = arith.addf %309, %308 : vector<2x8xf32>
    %311 = arith.divf %309, %310 : vector<2x8xf32>
    %312 = vector.extract_strided_slice %301 {offsets = [0, 8], sizes = [2, 8], strides = [1, 1]} : vector<2x24xf32> to vector<2x8xf32>
    %313 = vector.extract_strided_slice %303 {offsets = [0, 8], sizes = [2, 8], strides = [1, 1]} : vector<2x24xf32> to vector<2x8xf32>
    %314 = arith.addf %312, %313 : vector<2x8xf32>
    %315 = arith.negf %314 : vector<2x8xf32>
    %316 = math.exp %315 : vector<2x8xf32>
    %cst_61 = arith.constant 1.000000e+00 : f32
    %317 = vector.broadcast %cst_61 : f32 to vector<2x8xf32>
    %318 = arith.addf %317, %316 : vector<2x8xf32>
    %319 = arith.divf %317, %318 : vector<2x8xf32>
    %320 = vector.extract_strided_slice %301 {offsets = [0, 16], sizes = [2, 8], strides = [1, 1]} : vector<2x24xf32> to vector<2x8xf32>
    %321 = vector.extract_strided_slice %303 {offsets = [0, 16], sizes = [2, 8], strides = [1, 1]} : vector<2x24xf32> to vector<2x8xf32>
    %322 = arith.mulf %311, %321 : vector<2x8xf32>
    %323 = arith.addf %320, %322 : vector<2x8xf32>
    %324 = math.tanh %323 : vector<2x8xf32>
    %cst_62 = arith.constant 1.000000e+00 : f32
    %325 = vector.broadcast %cst_62 : f32 to vector<2x8xf32>
    %326 = arith.subf %325, %319 : vector<2x8xf32>
    %327 = arith.mulf %326, %324 : vector<2x8xf32>
    %328 = arith.mulf %319, %270 : vector<2x8xf32>
    %329 = arith.addf %327, %328 : vector<2x8xf32>
    %cst_63 = arith.constant dense<0.000000e+00> : vector<2x24xf32>
    %330 = tpu.matmul %329, %14, %cst_63 {dimension_numbers = #tpu.dot_dimension_numbers<[1], [0], [0], [1], [0, 0, 1, 1], [], []>} : vector<2x8xf32>, vector<8x24xf32>, vector<2x24xf32> -> vector<2x24xf32>
    %331 = arith.addf %330, %29 : vector<2x24xf32>
    %cst_64 = arith.constant dense<0.000000e+00> : vector<2x24xf32>
    %332 = tpu.matmul %300, %15, %cst_64 {dimension_numbers = #tpu.dot_dimension_numbers<[1], [0], [0], [1], [0, 0, 1, 1], [], []>} : vector<2x8xf32>, vector<8x24xf32>, vector<2x24xf32> -> vector<2x24xf32>
    %333 = arith.addf %332, %32 : vector<2x24xf32>
    %334 = vector.extract_strided_slice %331 {offsets = [0, 0], sizes = [2, 8], strides = [1, 1]} : vector<2x24xf32> to vector<2x8xf32>
    %335 = vector.extract_strided_slice %333 {offsets = [0, 0], sizes = [2, 8], strides = [1, 1]} : vector<2x24xf32> to vector<2x8xf32>
    %336 = arith.addf %334, %335 : vector<2x8xf32>
    %337 = arith.negf %336 : vector<2x8xf32>
    %338 = math.exp %337 : vector<2x8xf32>
    %cst_65 = arith.constant 1.000000e+00 : f32
    %339 = vector.broadcast %cst_65 : f32 to vector<2x8xf32>
    %340 = arith.addf %339, %338 : vector<2x8xf32>
    %341 = arith.divf %339, %340 : vector<2x8xf32>
    %342 = vector.extract_strided_slice %331 {offsets = [0, 8], sizes = [2, 8], strides = [1, 1]} : vector<2x24xf32> to vector<2x8xf32>
    %343 = vector.extract_strided_slice %333 {offsets = [0, 8], sizes = [2, 8], strides = [1, 1]} : vector<2x24xf32> to vector<2x8xf32>
    %344 = arith.addf %342, %343 : vector<2x8xf32>
    %345 = arith.negf %344 : vector<2x8xf32>
    %346 = math.exp %345 : vector<2x8xf32>
    %cst_66 = arith.constant 1.000000e+00 : f32
    %347 = vector.broadcast %cst_66 : f32 to vector<2x8xf32>
    %348 = arith.addf %347, %346 : vector<2x8xf32>
    %349 = arith.divf %347, %348 : vector<2x8xf32>
    %350 = vector.extract_strided_slice %331 {offsets = [0, 16], sizes = [2, 8], strides = [1, 1]} : vector<2x24xf32> to vector<2x8xf32>
    %351 = vector.extract_strided_slice %333 {offsets = [0, 16], sizes = [2, 8], strides = [1, 1]} : vector<2x24xf32> to vector<2x8xf32>
    %352 = arith.mulf %341, %351 : vector<2x8xf32>
    %353 = arith.addf %350, %352 : vector<2x8xf32>
    %354 = math.tanh %353 : vector<2x8xf32>
    %cst_67 = arith.constant 1.000000e+00 : f32
    %355 = vector.broadcast %cst_67 : f32 to vector<2x8xf32>
    %356 = arith.subf %355, %349 : vector<2x8xf32>
    %357 = arith.mulf %356, %354 : vector<2x8xf32>
    %358 = arith.mulf %349, %300 : vector<2x8xf32>
    %359 = arith.addf %357, %358 : vector<2x8xf32>
    %360 = vector.extract_strided_slice %62 {offsets = [10, 0], sizes = [2, 24], strides = [1, 1]} : vector<16x24xf32> to vector<2x24xf32>
    %cst_68 = arith.constant dense<0.000000e+00> : vector<2x24xf32>
    %361 = tpu.matmul %329, %13, %cst_68 {dimension_numbers = #tpu.dot_dimension_numbers<[1], [0], [0], [1], [0, 0, 1, 1], [], []>} : vector<2x8xf32>, vector<8x24xf32>, vector<2x24xf32> -> vector<2x24xf32>
    %362 = arith.addf %361, %26 : vector<2x24xf32>
    %363 = vector.extract_strided_slice %360 {offsets = [0, 0], sizes = [2, 8], strides = [1, 1]} : vector<2x24xf32> to vector<2x8xf32>
    %364 = vector.extract_strided_slice %362 {offsets = [0, 0], sizes = [2, 8], strides = [1, 1]} : vector<2x24xf32> to vector<2x8xf32>
    %365 = arith.addf %363, %364 : vector<2x8xf32>
    %366 = arith.negf %365 : vector<2x8xf32>
    %367 = math.exp %366 : vector<2x8xf32>
    %cst_69 = arith.constant 1.000000e+00 : f32
    %368 = vector.broadcast %cst_69 : f32 to vector<2x8xf32>
    %369 = arith.addf %368, %367 : vector<2x8xf32>
    %370 = arith.divf %368, %369 : vector<2x8xf32>
    %371 = vector.extract_strided_slice %360 {offsets = [0, 8], sizes = [2, 8], strides = [1, 1]} : vector<2x24xf32> to vector<2x8xf32>
    %372 = vector.extract_strided_slice %362 {offsets = [0, 8], sizes = [2, 8], strides = [1, 1]} : vector<2x24xf32> to vector<2x8xf32>
    %373 = arith.addf %371, %372 : vector<2x8xf32>
    %374 = arith.negf %373 : vector<2x8xf32>
    %375 = math.exp %374 : vector<2x8xf32>
    %cst_70 = arith.constant 1.000000e+00 : f32
    %376 = vector.broadcast %cst_70 : f32 to vector<2x8xf32>
    %377 = arith.addf %376, %375 : vector<2x8xf32>
    %378 = arith.divf %376, %377 : vector<2x8xf32>
    %379 = vector.extract_strided_slice %360 {offsets = [0, 16], sizes = [2, 8], strides = [1, 1]} : vector<2x24xf32> to vector<2x8xf32>
    %380 = vector.extract_strided_slice %362 {offsets = [0, 16], sizes = [2, 8], strides = [1, 1]} : vector<2x24xf32> to vector<2x8xf32>
    %381 = arith.mulf %370, %380 : vector<2x8xf32>
    %382 = arith.addf %379, %381 : vector<2x8xf32>
    %383 = math.tanh %382 : vector<2x8xf32>
    %cst_71 = arith.constant 1.000000e+00 : f32
    %384 = vector.broadcast %cst_71 : f32 to vector<2x8xf32>
    %385 = arith.subf %384, %378 : vector<2x8xf32>
    %386 = arith.mulf %385, %383 : vector<2x8xf32>
    %387 = arith.mulf %378, %329 : vector<2x8xf32>
    %388 = arith.addf %386, %387 : vector<2x8xf32>
    %cst_72 = arith.constant dense<0.000000e+00> : vector<2x24xf32>
    %389 = tpu.matmul %388, %14, %cst_72 {dimension_numbers = #tpu.dot_dimension_numbers<[1], [0], [0], [1], [0, 0, 1, 1], [], []>} : vector<2x8xf32>, vector<8x24xf32>, vector<2x24xf32> -> vector<2x24xf32>
    %390 = arith.addf %389, %29 : vector<2x24xf32>
    %cst_73 = arith.constant dense<0.000000e+00> : vector<2x24xf32>
    %391 = tpu.matmul %359, %15, %cst_73 {dimension_numbers = #tpu.dot_dimension_numbers<[1], [0], [0], [1], [0, 0, 1, 1], [], []>} : vector<2x8xf32>, vector<8x24xf32>, vector<2x24xf32> -> vector<2x24xf32>
    %392 = arith.addf %391, %32 : vector<2x24xf32>
    %393 = vector.extract_strided_slice %390 {offsets = [0, 0], sizes = [2, 8], strides = [1, 1]} : vector<2x24xf32> to vector<2x8xf32>
    %394 = vector.extract_strided_slice %392 {offsets = [0, 0], sizes = [2, 8], strides = [1, 1]} : vector<2x24xf32> to vector<2x8xf32>
    %395 = arith.addf %393, %394 : vector<2x8xf32>
    %396 = arith.negf %395 : vector<2x8xf32>
    %397 = math.exp %396 : vector<2x8xf32>
    %cst_74 = arith.constant 1.000000e+00 : f32
    %398 = vector.broadcast %cst_74 : f32 to vector<2x8xf32>
    %399 = arith.addf %398, %397 : vector<2x8xf32>
    %400 = arith.divf %398, %399 : vector<2x8xf32>
    %401 = vector.extract_strided_slice %390 {offsets = [0, 8], sizes = [2, 8], strides = [1, 1]} : vector<2x24xf32> to vector<2x8xf32>
    %402 = vector.extract_strided_slice %392 {offsets = [0, 8], sizes = [2, 8], strides = [1, 1]} : vector<2x24xf32> to vector<2x8xf32>
    %403 = arith.addf %401, %402 : vector<2x8xf32>
    %404 = arith.negf %403 : vector<2x8xf32>
    %405 = math.exp %404 : vector<2x8xf32>
    %cst_75 = arith.constant 1.000000e+00 : f32
    %406 = vector.broadcast %cst_75 : f32 to vector<2x8xf32>
    %407 = arith.addf %406, %405 : vector<2x8xf32>
    %408 = arith.divf %406, %407 : vector<2x8xf32>
    %409 = vector.extract_strided_slice %390 {offsets = [0, 16], sizes = [2, 8], strides = [1, 1]} : vector<2x24xf32> to vector<2x8xf32>
    %410 = vector.extract_strided_slice %392 {offsets = [0, 16], sizes = [2, 8], strides = [1, 1]} : vector<2x24xf32> to vector<2x8xf32>
    %411 = arith.mulf %400, %410 : vector<2x8xf32>
    %412 = arith.addf %409, %411 : vector<2x8xf32>
    %413 = math.tanh %412 : vector<2x8xf32>
    %cst_76 = arith.constant 1.000000e+00 : f32
    %414 = vector.broadcast %cst_76 : f32 to vector<2x8xf32>
    %415 = arith.subf %414, %408 : vector<2x8xf32>
    %416 = arith.mulf %415, %413 : vector<2x8xf32>
    %417 = arith.mulf %408, %359 : vector<2x8xf32>
    %418 = arith.addf %416, %417 : vector<2x8xf32>
    %419 = vector.extract_strided_slice %62 {offsets = [12, 0], sizes = [2, 24], strides = [1, 1]} : vector<16x24xf32> to vector<2x24xf32>
    %cst_77 = arith.constant dense<0.000000e+00> : vector<2x24xf32>
    %420 = tpu.matmul %388, %13, %cst_77 {dimension_numbers = #tpu.dot_dimension_numbers<[1], [0], [0], [1], [0, 0, 1, 1], [], []>} : vector<2x8xf32>, vector<8x24xf32>, vector<2x24xf32> -> vector<2x24xf32>
    %421 = arith.addf %420, %26 : vector<2x24xf32>
    %422 = vector.extract_strided_slice %419 {offsets = [0, 0], sizes = [2, 8], strides = [1, 1]} : vector<2x24xf32> to vector<2x8xf32>
    %423 = vector.extract_strided_slice %421 {offsets = [0, 0], sizes = [2, 8], strides = [1, 1]} : vector<2x24xf32> to vector<2x8xf32>
    %424 = arith.addf %422, %423 : vector<2x8xf32>
    %425 = arith.negf %424 : vector<2x8xf32>
    %426 = math.exp %425 : vector<2x8xf32>
    %cst_78 = arith.constant 1.000000e+00 : f32
    %427 = vector.broadcast %cst_78 : f32 to vector<2x8xf32>
    %428 = arith.addf %427, %426 : vector<2x8xf32>
    %429 = arith.divf %427, %428 : vector<2x8xf32>
    %430 = vector.extract_strided_slice %419 {offsets = [0, 8], sizes = [2, 8], strides = [1, 1]} : vector<2x24xf32> to vector<2x8xf32>
    %431 = vector.extract_strided_slice %421 {offsets = [0, 8], sizes = [2, 8], strides = [1, 1]} : vector<2x24xf32> to vector<2x8xf32>
    %432 = arith.addf %430, %431 : vector<2x8xf32>
    %433 = arith.negf %432 : vector<2x8xf32>
    %434 = math.exp %433 : vector<2x8xf32>
    %cst_79 = arith.constant 1.000000e+00 : f32
    %435 = vector.broadcast %cst_79 : f32 to vector<2x8xf32>
    %436 = arith.addf %435, %434 : vector<2x8xf32>
    %437 = arith.divf %435, %436 : vector<2x8xf32>
    %438 = vector.extract_strided_slice %419 {offsets = [0, 16], sizes = [2, 8], strides = [1, 1]} : vector<2x24xf32> to vector<2x8xf32>
    %439 = vector.extract_strided_slice %421 {offsets = [0, 16], sizes = [2, 8], strides = [1, 1]} : vector<2x24xf32> to vector<2x8xf32>
    %440 = arith.mulf %429, %439 : vector<2x8xf32>
    %441 = arith.addf %438, %440 : vector<2x8xf32>
    %442 = math.tanh %441 : vector<2x8xf32>
    %cst_80 = arith.constant 1.000000e+00 : f32
    %443 = vector.broadcast %cst_80 : f32 to vector<2x8xf32>
    %444 = arith.subf %443, %437 : vector<2x8xf32>
    %445 = arith.mulf %444, %442 : vector<2x8xf32>
    %446 = arith.mulf %437, %388 : vector<2x8xf32>
    %447 = arith.addf %445, %446 : vector<2x8xf32>
    %cst_81 = arith.constant dense<0.000000e+00> : vector<2x24xf32>
    %448 = tpu.matmul %447, %14, %cst_81 {dimension_numbers = #tpu.dot_dimension_numbers<[1], [0], [0], [1], [0, 0, 1, 1], [], []>} : vector<2x8xf32>, vector<8x24xf32>, vector<2x24xf32> -> vector<2x24xf32>
    %449 = arith.addf %448, %29 : vector<2x24xf32>
    %cst_82 = arith.constant dense<0.000000e+00> : vector<2x24xf32>
    %450 = tpu.matmul %418, %15, %cst_82 {dimension_numbers = #tpu.dot_dimension_numbers<[1], [0], [0], [1], [0, 0, 1, 1], [], []>} : vector<2x8xf32>, vector<8x24xf32>, vector<2x24xf32> -> vector<2x24xf32>
    %451 = arith.addf %450, %32 : vector<2x24xf32>
    %452 = vector.extract_strided_slice %449 {offsets = [0, 0], sizes = [2, 8], strides = [1, 1]} : vector<2x24xf32> to vector<2x8xf32>
    %453 = vector.extract_strided_slice %451 {offsets = [0, 0], sizes = [2, 8], strides = [1, 1]} : vector<2x24xf32> to vector<2x8xf32>
    %454 = arith.addf %452, %453 : vector<2x8xf32>
    %455 = arith.negf %454 : vector<2x8xf32>
    %456 = math.exp %455 : vector<2x8xf32>
    %cst_83 = arith.constant 1.000000e+00 : f32
    %457 = vector.broadcast %cst_83 : f32 to vector<2x8xf32>
    %458 = arith.addf %457, %456 : vector<2x8xf32>
    %459 = arith.divf %457, %458 : vector<2x8xf32>
    %460 = vector.extract_strided_slice %449 {offsets = [0, 8], sizes = [2, 8], strides = [1, 1]} : vector<2x24xf32> to vector<2x8xf32>
    %461 = vector.extract_strided_slice %451 {offsets = [0, 8], sizes = [2, 8], strides = [1, 1]} : vector<2x24xf32> to vector<2x8xf32>
    %462 = arith.addf %460, %461 : vector<2x8xf32>
    %463 = arith.negf %462 : vector<2x8xf32>
    %464 = math.exp %463 : vector<2x8xf32>
    %cst_84 = arith.constant 1.000000e+00 : f32
    %465 = vector.broadcast %cst_84 : f32 to vector<2x8xf32>
    %466 = arith.addf %465, %464 : vector<2x8xf32>
    %467 = arith.divf %465, %466 : vector<2x8xf32>
    %468 = vector.extract_strided_slice %449 {offsets = [0, 16], sizes = [2, 8], strides = [1, 1]} : vector<2x24xf32> to vector<2x8xf32>
    %469 = vector.extract_strided_slice %451 {offsets = [0, 16], sizes = [2, 8], strides = [1, 1]} : vector<2x24xf32> to vector<2x8xf32>
    %470 = arith.mulf %459, %469 : vector<2x8xf32>
    %471 = arith.addf %468, %470 : vector<2x8xf32>
    %472 = math.tanh %471 : vector<2x8xf32>
    %cst_85 = arith.constant 1.000000e+00 : f32
    %473 = vector.broadcast %cst_85 : f32 to vector<2x8xf32>
    %474 = arith.subf %473, %467 : vector<2x8xf32>
    %475 = arith.mulf %474, %472 : vector<2x8xf32>
    %476 = arith.mulf %467, %418 : vector<2x8xf32>
    %477 = arith.addf %475, %476 : vector<2x8xf32>
    %478 = vector.extract_strided_slice %62 {offsets = [14, 0], sizes = [2, 24], strides = [1, 1]} : vector<16x24xf32> to vector<2x24xf32>
    %cst_86 = arith.constant dense<0.000000e+00> : vector<2x24xf32>
    %479 = tpu.matmul %447, %13, %cst_86 {dimension_numbers = #tpu.dot_dimension_numbers<[1], [0], [0], [1], [0, 0, 1, 1], [], []>} : vector<2x8xf32>, vector<8x24xf32>, vector<2x24xf32> -> vector<2x24xf32>
    %480 = arith.addf %479, %26 : vector<2x24xf32>
    %481 = vector.extract_strided_slice %478 {offsets = [0, 0], sizes = [2, 8], strides = [1, 1]} : vector<2x24xf32> to vector<2x8xf32>
    %482 = vector.extract_strided_slice %480 {offsets = [0, 0], sizes = [2, 8], strides = [1, 1]} : vector<2x24xf32> to vector<2x8xf32>
    %483 = arith.addf %481, %482 : vector<2x8xf32>
    %484 = arith.negf %483 : vector<2x8xf32>
    %485 = math.exp %484 : vector<2x8xf32>
    %cst_87 = arith.constant 1.000000e+00 : f32
    %486 = vector.broadcast %cst_87 : f32 to vector<2x8xf32>
    %487 = arith.addf %486, %485 : vector<2x8xf32>
    %488 = arith.divf %486, %487 : vector<2x8xf32>
    %489 = vector.extract_strided_slice %478 {offsets = [0, 8], sizes = [2, 8], strides = [1, 1]} : vector<2x24xf32> to vector<2x8xf32>
    %490 = vector.extract_strided_slice %480 {offsets = [0, 8], sizes = [2, 8], strides = [1, 1]} : vector<2x24xf32> to vector<2x8xf32>
    %491 = arith.addf %489, %490 : vector<2x8xf32>
    %492 = arith.negf %491 : vector<2x8xf32>
    %493 = math.exp %492 : vector<2x8xf32>
    %cst_88 = arith.constant 1.000000e+00 : f32
    %494 = vector.broadcast %cst_88 : f32 to vector<2x8xf32>
    %495 = arith.addf %494, %493 : vector<2x8xf32>
    %496 = arith.divf %494, %495 : vector<2x8xf32>
    %497 = vector.extract_strided_slice %478 {offsets = [0, 16], sizes = [2, 8], strides = [1, 1]} : vector<2x24xf32> to vector<2x8xf32>
    %498 = vector.extract_strided_slice %480 {offsets = [0, 16], sizes = [2, 8], strides = [1, 1]} : vector<2x24xf32> to vector<2x8xf32>
    %499 = arith.mulf %488, %498 : vector<2x8xf32>
    %500 = arith.addf %497, %499 : vector<2x8xf32>
    %501 = math.tanh %500 : vector<2x8xf32>
    %cst_89 = arith.constant 1.000000e+00 : f32
    %502 = vector.broadcast %cst_89 : f32 to vector<2x8xf32>
    %503 = arith.subf %502, %496 : vector<2x8xf32>
    %504 = arith.mulf %503, %501 : vector<2x8xf32>
    %505 = arith.mulf %496, %447 : vector<2x8xf32>
    %506 = arith.addf %504, %505 : vector<2x8xf32>
    %cst_90 = arith.constant dense<0.000000e+00> : vector<2x24xf32>
    %507 = tpu.matmul %506, %14, %cst_90 {dimension_numbers = #tpu.dot_dimension_numbers<[1], [0], [0], [1], [0, 0, 1, 1], [], []>} : vector<2x8xf32>, vector<8x24xf32>, vector<2x24xf32> -> vector<2x24xf32>
    %508 = arith.addf %507, %29 : vector<2x24xf32>
    %cst_91 = arith.constant dense<0.000000e+00> : vector<2x24xf32>
    %509 = tpu.matmul %477, %15, %cst_91 {dimension_numbers = #tpu.dot_dimension_numbers<[1], [0], [0], [1], [0, 0, 1, 1], [], []>} : vector<2x8xf32>, vector<8x24xf32>, vector<2x24xf32> -> vector<2x24xf32>
    %510 = arith.addf %509, %32 : vector<2x24xf32>
    %511 = vector.extract_strided_slice %508 {offsets = [0, 0], sizes = [2, 8], strides = [1, 1]} : vector<2x24xf32> to vector<2x8xf32>
    %512 = vector.extract_strided_slice %510 {offsets = [0, 0], sizes = [2, 8], strides = [1, 1]} : vector<2x24xf32> to vector<2x8xf32>
    %513 = arith.addf %511, %512 : vector<2x8xf32>
    %514 = arith.negf %513 : vector<2x8xf32>
    %515 = math.exp %514 : vector<2x8xf32>
    %cst_92 = arith.constant 1.000000e+00 : f32
    %516 = vector.broadcast %cst_92 : f32 to vector<2x8xf32>
    %517 = arith.addf %516, %515 : vector<2x8xf32>
    %518 = arith.divf %516, %517 : vector<2x8xf32>
    %519 = vector.extract_strided_slice %508 {offsets = [0, 8], sizes = [2, 8], strides = [1, 1]} : vector<2x24xf32> to vector<2x8xf32>
    %520 = vector.extract_strided_slice %510 {offsets = [0, 8], sizes = [2, 8], strides = [1, 1]} : vector<2x24xf32> to vector<2x8xf32>
    %521 = arith.addf %519, %520 : vector<2x8xf32>
    %522 = arith.negf %521 : vector<2x8xf32>
    %523 = math.exp %522 : vector<2x8xf32>
    %cst_93 = arith.constant 1.000000e+00 : f32
    %524 = vector.broadcast %cst_93 : f32 to vector<2x8xf32>
    %525 = arith.addf %524, %523 : vector<2x8xf32>
    %526 = arith.divf %524, %525 : vector<2x8xf32>
    %527 = vector.extract_strided_slice %508 {offsets = [0, 16], sizes = [2, 8], strides = [1, 1]} : vector<2x24xf32> to vector<2x8xf32>
    %528 = vector.extract_strided_slice %510 {offsets = [0, 16], sizes = [2, 8], strides = [1, 1]} : vector<2x24xf32> to vector<2x8xf32>
    %529 = arith.mulf %518, %528 : vector<2x8xf32>
    %530 = arith.addf %527, %529 : vector<2x8xf32>
    %531 = math.tanh %530 : vector<2x8xf32>
    %cst_94 = arith.constant 1.000000e+00 : f32
    %532 = vector.broadcast %cst_94 : f32 to vector<2x8xf32>
    %533 = arith.subf %532, %526 : vector<2x8xf32>
    %534 = arith.mulf %533, %531 : vector<2x8xf32>
    %535 = arith.mulf %526, %477 : vector<2x8xf32>
    %536 = arith.addf %534, %535 : vector<2x8xf32>
    %cst_95 = arith.constant dense<0.000000e+00> : vector<2x8xf32>
    %537 = tpu.matmul %536, %6, %cst_95 {dimension_numbers = #tpu.dot_dimension_numbers<[1], [0], [0], [1], [0, 0, 1, 1], [], []>} : vector<2x8xf32>, vector<8x8xf32>, vector<2x8xf32> -> vector<2x8xf32>
    %538 = vector.broadcast %18 : vector<1x8xf32> to vector<2x8xf32>
    %539 = arith.addf %537, %538 : vector<2x8xf32>
    %cst_96 = arith.constant 1.000000e-01 : f32
    %540 = vector.broadcast %cst_96 : f32 to vector<2x8xf32>
    %541 = arith.mulf %540, %539 : vector<2x8xf32>
    %542 = arith.maximumf %539, %541 : vector<2x8xf32>
    %cst_97 = arith.constant dense<0.000000e+00> : vector<2x8xf32>
    %543 = tpu.matmul %542, %10, %cst_97 {dimension_numbers = #tpu.dot_dimension_numbers<[1], [0], [0], [1], [0, 0, 1, 1], [], []>} : vector<2x8xf32>, vector<8x8xf32>, vector<2x8xf32> -> vector<2x8xf32>
    %544 = vector.broadcast %21 : vector<1x8xf32> to vector<2x8xf32>
    %545 = arith.addf %543, %544 : vector<2x8xf32>
    %c0_98 = arith.constant 0 : index
    %c0_99 = arith.constant 0 : index
    %c0_100 = arith.constant 0 : index
    %546 = vector.load %arg3[%c0_98, %c0_99, %c0_100] : memref<4x2x1xf32, #tpu.memory_space<vmem>>, vector<4x2x1xf32>
    %547 = vector.shape_cast %34 : vector<2x1xf32> to vector<1x2x1xf32>
    %548 = vector.broadcast %547 : vector<1x2x1xf32> to vector<4x2x1xf32>
    %549 = arith.subf %546, %548 : vector<4x2x1xf32>
    %cst_101 = arith.constant 2.000000e-01 : f32
    %550 = vector.broadcast %cst_101 : f32 to vector<4x2x1xf32>
    %551 = arith.mulf %549, %550 : vector<4x2x1xf32>
    %552 = vector.shape_cast %551 : vector<4x2x1xf32> to vector<8x1xf32>
    %553 = vector.broadcast %552 : vector<8x1xf32> to vector<8x8xf32>
    %554 = vector.broadcast %7 : vector<1x8xf32> to vector<8x8xf32>
    %555 = arith.mulf %553, %554 : vector<8x8xf32>
    %556 = vector.broadcast %19 : vector<1x8xf32> to vector<8x8xf32>
    %557 = arith.addf %555, %556 : vector<8x8xf32>
    %cst_102 = arith.constant 1.000000e-01 : f32
    %558 = vector.broadcast %cst_102 : f32 to vector<8x8xf32>
    %559 = arith.mulf %558, %557 : vector<8x8xf32>
    %560 = arith.maximumf %557, %559 : vector<8x8xf32>
    %cst_103 = arith.constant dense<0.000000e+00> : vector<8x8xf32>
    %561 = tpu.matmul %560, %8, %cst_103 {dimension_numbers = #tpu.dot_dimension_numbers<[1], [0], [0], [1], [0, 0, 1, 1], [], []>} : vector<8x8xf32>, vector<8x8xf32>, vector<8x8xf32> -> vector<8x8xf32>
    %562 = vector.broadcast %20 : vector<1x8xf32> to vector<8x8xf32>
    %563 = arith.addf %561, %562 : vector<8x8xf32>
    %cst_104 = arith.constant 1.000000e-01 : f32
    %564 = vector.broadcast %cst_104 : f32 to vector<8x8xf32>
    %565 = arith.mulf %564, %563 : vector<8x8xf32>
    %566 = arith.maximumf %563, %565 : vector<8x8xf32>
    %567 = vector.shape_cast %545 : vector<2x8xf32> to vector<1x2x8xf32>
    %568 = vector.shape_cast %567 : vector<1x2x8xf32> to vector<1x2x8xf32>
    %569 = vector.broadcast %568 : vector<1x2x8xf32> to vector<4x2x8xf32>
    %570 = vector.shape_cast %569 : vector<4x2x8xf32> to vector<8x8xf32>
    %cst_105 = arith.constant dense<0.000000e+00> : vector<8x8xf32>
    %571 = tpu.matmul %566, %9, %cst_105 {dimension_numbers = #tpu.dot_dimension_numbers<[1], [0], [0], [1], [0, 0, 1, 1], [], []>} : vector<8x8xf32>, vector<8x8xf32>, vector<8x8xf32> -> vector<8x8xf32>
    %572 = arith.addf %571, %570 : vector<8x8xf32>
    %cst_106 = arith.constant 1.000000e-01 : f32
    %573 = vector.broadcast %cst_106 : f32 to vector<8x8xf32>
    %574 = arith.mulf %573, %572 : vector<8x8xf32>
    %575 = arith.maximumf %572, %574 : vector<8x8xf32>
    %cst_107 = arith.constant dense<0.000000e+00> : vector<8x8xf32>
    %576 = tpu.matmul %575, %11, %cst_107 {dimension_numbers = #tpu.dot_dimension_numbers<[1], [0], [0], [1], [0, 0, 1, 1], [], []>} : vector<8x8xf32>, vector<8x8xf32>, vector<8x8xf32> -> vector<8x8xf32>
    %577 = vector.broadcast %22 : vector<1x8xf32> to vector<8x8xf32>
    %578 = arith.addf %576, %577 : vector<8x8xf32>
    %579 = vector.shape_cast %578 : vector<8x8xf32> to vector<4x2x8xf32>
    %c0_108 = arith.constant 0 : index
    %c0_109 = arith.constant 0 : index
    %c0_110 = arith.constant 0 : index
    %580 = vector.load %arg8[%c0_108, %c0_109, %c0_110] : memref<4x2x8xf32, #tpu.memory_space<vmem>>, vector<4x2x8xf32>
    tpu.vector_store %arg8[%c0_108, %c0_109, %c0_110], %579 {strides = array<i32>} : memref<4x2x8xf32, #tpu.memory_space<vmem>>, vector<4x2x8xf32>,
    return
  }
  func.func @transform_0(%arg0: i32) -> (i32, i32, i32) {
    %c0_i32 = arith.constant 0 : i32
    %c0_i32_0 = arith.constant 0 : i32
    %c0_i32_1 = arith.constant 0 : i32
    return %c0_i32, %arg0, %c0_i32_0 : i32, i32, i32
  }
  func.func @transform_1(%arg0: i32) -> (i32, i32, i32) {
    %c0_i32 = arith.constant 0 : i32
    %c0_i32_0 = arith.constant 0 : i32
    %c0_i32_1 = arith.constant 0 : i32
    return %c0_i32, %arg0, %c0_i32_0 : i32, i32, i32
  }
  func.func @transform_2(%arg0: i32) -> (i32, i32, i32) {
    %c0_i32 = arith.constant 0 : i32
    %c0_i32_0 = arith.constant 0 : i32
    %c0_i32_1 = arith.constant 0 : i32
    return %c0_i32, %arg0, %c0_i32_0 : i32, i32, i32
  }
  func.func @transform_3(%arg0: i32) -> (i32, i32) {
    %c0_i32 = arith.constant 0 : i32
    %c0_i32_0 = arith.constant 0 : i32
    %c0_i32_1 = arith.constant 0 : i32
    return %c0_i32, %c0_i32_0 : i32, i32
  }
  func.func @transform_4(%arg0: i32) -> (i32, i32) {
    %c0_i32 = arith.constant 0 : i32
    %c0_i32_0 = arith.constant 0 : i32
    %c0_i32_1 = arith.constant 0 : i32
    return %c0_i32, %c0_i32_0 : i32, i32
  }
  func.func @transform_5(%arg0: i32) -> (i32, i32) {
    %c0_i32 = arith.constant 0 : i32
    %c0_i32_0 = arith.constant 0 : i32
    %c0_i32_1 = arith.constant 0 : i32
    return %c0_i32, %c0_i32_0 : i32, i32
  }
  func.func @transform_6(%arg0: i32) -> (i32, i32) {
    %c0_i32 = arith.constant 0 : i32
    %c0_i32_0 = arith.constant 0 : i32
    %c0_i32_1 = arith.constant 0 : i32
    return %c0_i32, %c0_i32_0 : i32, i32
  }
  func.func @transform_7(%arg0: i32) -> (i32, i32, i32) {
    %c0_i32 = arith.constant 0 : i32
    %c0_i32_0 = arith.constant 0 : i32
    %c0_i32_1 = arith.constant 0 : i32
    return %c0_i32, %arg0, %c0_i32_0 : i32, i32, i32
  }
}

</mosaic_0001>

<bundles_post_ra>
// kernel: tpu_custom_call.1
= control target key start
LH: loop header
LB: loop body
LE: loop exit
PB: predicated region body
PF: predicated region fallthrough
CT: control target
= control target key end

     0   :  { %vm307_vm0 = vcmask 1043456   ;;  %v42_v1 = vlaneseq  ;;  %v3777_v7 = vmov 1983009808   ;;  %v3778_v18 = vmov 0   ;;  %s4330_s0 = inlined_call_operand.vmem [shape: f32[8,2,1], index: 0, kind: input, shape index: {}]   ;;  %s4331_s1 = inlined_call_operand.vmem [shape: f32[8,2,4], index: 1, kind: input, shape index: {}]   ;;  %s4332_s2 = inlined_call_operand.vmem [shape: f32[4,2,1], index: 2, kind: input, shape index: {}]   ;;  %s4333_s3 = inlined_call_operand.vmem [shape: f32[64,8], index: 3, kind: input, shape index: {}]   ;;  %s4334_s4 = inlined_call_operand.vmem [shape: f32[32,24], index: 4, kind: input, shape index: {}]   ;;  %s4335_s5 = inlined_call_operand.vmem [shape: f32[11,24], index: 5, kind: input, shape index: {}]   ;;  %s4336_s6 = inlined_call_operand.vmem [shape: f32[8,8], index: 6, kind: input, shape index: {}]   ;;  %s4337_s7 = inlined_call_operand.hbm [shape: f32[4,2,8], index: 7, kind: output, shape index: {}]  }
   0x1   :  { %v27_v0 = vld [vmem:[%s4333_s3] sm:$0xff]  ;;  %v189_v8 = vunpack.c.l.s4 %v3777_v7  ;;  %v82_v9 = vld [vmem:[%s4331_s1 + $0x8] sm:$0x3]  ;;  %v83_v10 = vld [vmem:[%s4331_s1 + $0xa] sm:$0x3]  ;;  %3656 = vset.pattern.permute.xlu1 %v3778_v18  ;;  %3655 = vset.pattern.permute.xlu0 %v3778_v18 }
   0x2   :  { %v78_v2 = vld [vmem:[%s4331_s1] sm:$0x3]  ;;  %v79_v3 = vld [vmem:[%s4331_s1 + $0x2] sm:$0x3]  ;;  %3484 = vmatprep.subr.msk.mxu0 %vm307_vm0, %v27_v0  ;;  %v80_v4 = vld [vmem:[%s4331_s1 + $0x4] sm:$0x3]  ;;  %v241_v16 = vcombine.low %v82_v9, %v83_v10 }
   0x3   :  { %v81_v5 = vld [vmem:[%s4331_s1 + $0x6] sm:$0x3]  ;;  %3485 = vmatpush3.msk.msra.mxu0 %vm307_vm0, %v27_v0  ;;  %v3843_v6 = vshrl.u32 %v42_v1, 7  ;;  %v224_v11 = vcombine.low %v78_v2, %v79_v3  ;;  %v84_v12 = vld [vmem:[%s4331_s1 + $0xc] sm:$0x3]  ;;  %v190_v14 = vunpack.c.0.s8 %v189_v8 }
   0x4   :  { %v85_v13 = vld [vmem:[%s4331_s1 + $0xe] sm:$0x3]  ;;  %v225_v15 = vcombine.low %v80_v4, %v81_v5  ;;  %v54_v19 = vld [vmem:[%s4330_s0] sm:$0x3]  ;;  %v56_v20 = vld [vmem:[%s4330_s0 + $0x4] sm:$0x3] }
   0x5   :  { %v242_v17 = vcombine.low %v84_v12, %v85_v13  ;;  %v57_v21 = vld [vmem:[%s4330_s0 + $0x6] sm:$0x3]  ;;  %v64_v22 = vsub.f32 %v56_v20, %v54_v19  ;;  %v62_v23 = vsub.f32 %v54_v19, %v54_v19  ;;  %v55_v25 = vld [vmem:[%s4330_s0 + $0x2] sm:$0x3]  ;;  %v3870_v26 = vsub.s32 %v190_v14, %v3843_v6  ;;  %v59_v28 = vld [vmem:[%s4330_s0 + $0xa] sm:$0x3] }
   0x6   :  { %v65_v24 = vsub.f32 %v57_v21, %v54_v19  ;;  %v63_v27 = vsub.f32 %v55_v25, %v54_v19  ;;  %v58_v31 = vld [vmem:[%s4330_s0 + $0x8] sm:$0x3] }
   0x7   :  { %v72_v29 = vmul.f32 0.2, %v64_v22  ;;  %v70_v30 = vmul.f32 0.2, %v62_v23  ;;  %v232_v32 = vrot.slane %v224_v11, %v3870_v26  ;;  %v239_v33 = vrot.slane %v225_v15, %v3870_v26 }
   0x8   :  { %v249_v34 = vrot.slane %v241_v16, %v3870_v26  ;;  %v256_v35 = vrot.slane %v242_v17, %v3870_v26 }
   0x9   :  { %12 = vsyncpa [#allocation3], 0  ;;  %vm302_vm1 = vcmask 31744   ;;  %112 = vperm.xlu1 %3656, %v72_v29   ;;  %88 = vperm.xlu0 %3655, %v70_v30   ;;  %v73_v36 = vmul.f32 0.2, %v65_v24  ;;  %v67_v37 = vsub.f32 %v59_v28, %v54_v19  ;;  %v240_v38 = vcombine.low %v232_v32, %v239_v33  ;;  %v29_v50 = vld [vmem:[%s4333_s3 + $0x10] sm:$0xff] }
   0xa   :  { %v257_v39 = vcombine.low %v249_v34, %v256_v35  ;;  %v71_v40 = vmul.f32 0.2, %v63_v27  ;;  %v66_v41 = vsub.f32 %v58_v31, %v54_v19  ;;  %v61_v42 = vld [vmem:[%s4330_s0 + $0xe] sm:$0x3]  ;;  %v60_v43 = vld [vmem:[%s4330_s0 + $0xc] sm:$0x3]  ;;  %3489 = vmatprep.subr.mxu1 %v29_v50 }
   0xb   :  { %3486 = vmatprep.mubr.msk.f32.mxu0 %vm302_vm1, %v240_v38  ;;  %v75_v44 = vmul.f32 0.2, %v67_v37  ;;  %v69_v45 = vsub.f32 %v61_v42, %v54_v19  ;;  %v68_v47 = vsub.f32 %v60_v43, %v54_v19  ;;  %3490 = vmatpush3.msra.mxu1 %v29_v50  ;;  %v3779_v51 = vmov 0.0   ;;  %v28_v55 = vld [vmem:[%s4333_s3 + $0x8] sm:$0xff]  ;;  %v3917_v32 = vld [vmem:[%s4335_s5] sm:$0xff]  ;;  %s3782_s21 = smov 112  }
   0xc   :  { %3487 = vmatmul.mubr.msk.f32.vlgmr.msra.gmra.mxu0 %vm302_vm1, %v257_v39  ;;  %v74_v46 = vmul.f32 0.2, %v66_v41  ;;  %3499 = vmatprep.subr.mxu1 %v3779_v51  ;;  %v3893_v54 = vsub.s32 0, %v3843_v6  ;;  %v3780_v59 = vmov 269488144   ;;  %vm400_vm2 = vcmask 64512  }
   0xd   :  { %124 = vperm.xlu1 %3656, %v73_v36   ;;  %100 = vperm.xlu0 %3655, %v71_v40   ;;  %v77_v48 = vmul.f32 0.2, %v69_v45  ;;  %v76_v49 = vmul.f32 0.2, %v68_v47  ;;  %v92_v60 = vunpack.c.l.s4 %v3780_v59  ;;  %vm3781_vm3 = vmmov 0   ;;  %s3783_s22 = smov 16  }
   0xe   :  { %v185_v58 = vrot.slane %v28_v55, %v3893_v54  ;;  %v389_v36 = vrot.slane %v3917_v32, %v3893_v54  ;;  %v398_v50 = vsub.s32 1, %v3843_v6  ;;  %vm3346_vm4 = vcmask 58368  }
   0xf   :  { %v93_v0 = vunpack.c.0.s8 %v92_v60 }
  0x10   :  { %v187_v61 = vcombine.high %v185_v58, %v185_v58  ;;  %v194_v2 = vrot.slane %v185_v58, %v3870_v26 }
  0x11   :  { %148 = vperm.xlu1 %3656, %v75_v44   ;;  %136 = vperm.xlu0 %3655, %v74_v46   ;;  %v3902_v3 = vsub.s32 %v93_v0, %v3843_v6 }
  0x12   :  { %v201_v1 = vrot.slane %v187_v61, %v3870_v26  ;;  %v202_v8 = vcombine.high %v194_v2, %v194_v2 }
  0x14   :  { %v203_v7 = vcombine.high %v201_v1, %v201_v1 }
  0x15   :  { %172 = vperm.xlu1 %3656, %v77_v48   ;;  %160 = vperm.xlu0 %3655, %v76_v49   ;;  %v3926_v48 = vld [vmem:[%s4334_s4 + $0x8] sm:$0xff]  ;;  %v35_v49 = vld [vmem:[%s4334_s4] sm:$0xff] }
  0x16   :  { %3494 = vmatprep.subr.mxu0 %v35_v49 }
  0x17   :  { %3495 = vmatpush3.msra.mxu0 %v35_v49 }
  0x18   :  { %3504 = vmatprep.subr.mxu0 %v3779_v51 }
  0x84   :  { %v113_v52 = vpop.permute.xlu1 %112  ;;  %v89_v53 = vpop.permute.xlu0 %88 }
  0x85   :  { %v121_v13 = vrot.slane %v113_v52, %v3902_v3  ;;  %v97_v14 = vrot.slane %v89_v53, %v3902_v3  ;;  %v399_v52 = vrot.slane %v3917_v32, %v398_v50  ;;  %v44_v53 = vsub.s32 3, %v3843_v6 }
  0x87   :  { %v210_v21 = vmul.f32 %v201_v1, %v121_v13  ;;  %v208_v22 = vmul.f32 %v194_v2, %v97_v14 }
  0x88   :  { %v125_v56 = vpop.permute.xlu1 %124  ;;  %v101_v57 = vpop.permute.xlu0 %100 }
  0x89   :  { %v133_v15 = vrot.slane %v125_v56, %v3902_v3  ;;  %v109_v16 = vrot.slane %v101_v57, %v3902_v3  ;;  %v3947_v57 = vrot.slane %v3917_v32, %v44_v53 }
  0x8b   :  { %v211_v23 = vmul.f32 %v203_v7, %v133_v15  ;;  %v209_v24 = vmul.f32 %v202_v8, %v109_v16 }
  0x8c   :  { %v149_v62 = vpop.permute.xlu1 %148  ;;  %v137_v63 = vpop.permute.xlu0 %136 }
  0x8d   :  { %v157_v9 = vrot.slane %v149_v62, %v3902_v3  ;;  %v145_v10 = vrot.slane %v137_v63, %v3902_v3  ;;  %v267_v28 = vcombine.low %v210_v21, %v211_v23  ;;  %v266_v29 = vcombine.low %v208_v22, %v209_v24  ;;  %v3974_v21 = vld [vmem:[%s4334_s4 + $0x10] sm:$0xff] }
  0x8f   :  { %v213_v17 = vmul.f32 %v202_v8, %v157_v9  ;;  %v212_v18 = vmul.f32 %v194_v2, %v145_v10  ;;  %v274_v33 = vrot.slane %v266_v29, %v3870_v26  ;;  %v281_v34 = vrot.slane %v267_v28, %v3870_v26 }
  0x90   :  { %v173_v4 = vpop.permute.xlu1 %172  ;;  %v161_v5 = vpop.permute.xlu0 %160  ;;  %v52_v29 = vsub.s32 5, %v3843_v6 }
  0x91   :  { %v181_v11 = vrot.slane %v173_v4, %v3902_v3  ;;  %v169_v12 = vrot.slane %v161_v5, %v3902_v3  ;;  %v283_v25 = vcombine.low %v212_v18, %v213_v17  ;;  %v282_v39 = vcombine.low %v274_v33, %v281_v34 }
  0x92   :  { %v488_v4 = vsub.s32 2, %v3843_v6 }
  0x93   :  { %v215_v19 = vmul.f32 %v203_v7, %v181_v11  ;;  %v214_v20 = vmul.f32 %v201_v1, %v169_v12  ;;  %v291_v30 = vrot.slane %v283_v25, %v3870_v26 }
  0x94   :  { %v489_v5 = vrot.slane %v3917_v32, %v488_v4 }
  0x95   :  { %v284_v27 = vcombine.low %v214_v20, %v215_v19  ;;  %v3969_v20 = vld [vmem:[%s4334_s4 + $0x18] sm:$0xff]  ;;  %s3784_s4 = smov 120  }
  0x97   :  { %v298_v31 = vrot.slane %v284_v27, %v3870_v26 }
  0x99   :  { %v299_v35 = vcombine.low %v291_v30, %v298_v31  ;;  %v3992_v30 = vrot.slane %v3917_v32, %v52_v29 }
  0xcc   :  { %v3488_v37 = vpop.f32.mrf.mxu0 }
  0xcd   :  { %v383_v38 = vadd.f32 %v3488_v37, %v299_v35 }
  0xce   :  { %v377_v40 = vpop.f32.mrf.mxu0 }
  0xcf   :  { %v391_v41 = vadd.f32 %v389_v36, %v383_v38  ;;  %v378_v42 = vadd.f32 %v377_v40, %v282_v39 }
  0xd1   :  { %v390_v43 = vadd.f32 %v389_v36, %v378_v42  ;;  %v393_v44 = vmul.f32 0.1, %v391_v41  ;;  %v48_v36 = vsub.s32 4, %v3843_v6 }
  0xd3   :  { %v392_v45 = vmul.f32 0.1, %v390_v43  ;;  %v395_v47 = vmax.f32 %v391_v41, %v393_v44  ;;  %v4008_v37 = vrot.slane %v3917_v32, %v48_v36 }
  0xd5   :  { %v394_v46 = vmax.f32 %v390_v43, %v392_v45 }
  0xd7   :  { %3491 = vmatprep.mubr.msk.f32.mxu1 %vm400_vm2, %v394_v46 }
  0xd8   :  { %3492 = vmatmul.mubr.msk.f32.vlgmr.msra.gmra.mxu1 %vm400_vm2, %v395_v47 }
  0xd9   :  { %3500 = vmatpush3.msra.mxu1 %v3926_v48  ;;  %3501 = vmatprep.mubr.msk.f32.mxu1 %vm3781_vm3, %v3779_v51 }
  0xda   :  { %3509 = vmatprep.subr.mxu1 %v3779_v51 }
  0xdc   :  { %3502 = vmatmul.mubr.f32.vlgmr.msra.gmra.mxu1 %v3779_v51 }
  0xdd   :  { %3511 = vmatprep.mubr.msk.f32.mxu1 %vm3781_vm3, %v3779_v51  ;;  %3510 = vmatpush3.msra.mxu1 %v3969_v20 }
  0xde   :  { %3519 = vmatprep.subr.mxu1 %v3779_v51 }
  0xe0   :  { %3512 = vmatmul.mubr.f32.vlgmr.msra.gmra.mxu1 %v3779_v51 }
  0xe1   :  { %3521 = vmatprep.mubr.msk.f32.mxu1 %vm3781_vm3, %v3779_v51  ;;  %3520 = vmatpush3.msra.mxu1 %v3974_v21 }
  0xe2   :  { %3529 = vmatprep.subr.mxu1 %v3779_v51 }
 0x198   :  { %v3493_v55 = vpop.f32.mrf.mxu1 }
 0x199   :  { %v479_v56 = vadd.f32 %v3493_v55, %v399_v52 }
 0x19a   :  { %v473_v58 = vpop.f32.mrf.mxu1 }
 0x19b   :  { %v474_v59 = vadd.f32 %v473_v58, %v399_v52  ;;  %v483_v60 = vmul.f32 0.1, %v479_v56 }
 0x19c   :  { %v640_v61 = vpop.f32.mrf.mxu1 }
 0x19d   :  { %v482_v62 = vmul.f32 0.1, %v474_v59  ;;  %v641_v63 = vadd.f32 %v640_v61, %v3947_v57  ;;  %v485_v2 = vmax.f32 %v479_v56, %v483_v60 }
 0x19e   :  { %v3503_v0 = vpop.f32.mrf.mxu1 }
 0x19f   :  { %v484_v1 = vmax.f32 %v474_v59, %v482_v62  ;;  %652 = vrot.lane.b32.xlu0 %v641_v63, %s3782_s21 }
 0x1a0   :  { %v811_v31 = vpop.f32.mrf.mxu1 }
 0x1a1   :  { %3496 = vmatprep.mubr.msk.f32.mxu0 %vm400_vm2, %v484_v1  ;;  %v812_v33 = vadd.f32 %v811_v31, %v3992_v30 }
 0x1a2   :  { %3497 = vmatmul.mubr.msk.f32.vlgmr.msra.gmra.mxu0 %vm400_vm2, %v485_v2  ;;  %v3513_v34 = vpop.f32.mrf.mxu1 }
 0x1a3   :  { %3506 = vmatprep.mubr.msk.f32.mxu0 %vm3781_vm3, %v3779_v51  ;;  %3505 = vmatpush3.msra.mxu0 %v3974_v21 }
 0x1a4   :  { %3514 = vmatprep.subr.mxu0 %v3779_v51 }
 0x211   :  { %v653_v15 = vpop.permute.xlu0 %652 }
 0x262   :  { %v3498_v7 = vpop.f32.mrf.mxu0 }
 0x263   :  { %v3959_v8 = vadd.f32 %v3498_v7, %v489_v5 }
 0x264   :  { %v562_v9 = vpop.f32.mrf.mxu0 }
 0x265   :  { %v3961_v10 = vadd.f32 %v562_v9, %v489_v5 }
 0x267   :  { %v644_v11 = vadd.f32 %v641_v63, %v3961_v10 }
 0x269   :  { %v3374_v12 = vmul.f32 -1.442695, %v644_v11 }
 0x26b   :  { %3657 = vpow2.f32 %v3374_v12 }
 0x278   :  { %v3658_v13 = vpop.eup %3657 }
 0x279   :  { %v648_v14 = vadd.f32 1.0, %v3658_v13 }
 0x27b   :  { %3659 = vrcp.f32 %v648_v14 }
 0x288   :  { %v3660_v16 = vpop.eup %3659 }
 0x289   :  { %v655_v17 = vmul.f32 %v3660_v16, %v653_v15  ;;  %v662_v23 = vsub.f32 1.0, %v3660_v16  ;;  %v668_v25 = vmul.f32 0.0, %v3660_v16 }
 0x28b   :  { %657 = vrot.lane.b32.xlu1 %v655_v17, %s3783_s22 }
 0x2fd   :  { %v658_v18 = vpop.permute.xlu1 %657 }
 0x2fe   :  { %v660_v19 = vadd.f32 %v658_v18, %v3961_v10 }
 0x300   :  { %3661 = vtanh.f32 %v660_v19 }
 0x30d   :  { %v3662_v22 = vpop.eup %3661 }
 0x30e   :  { %664 = vrot.lane.b32.xlu0 %v3662_v22, %s3784_s4 }
 0x380   :  { %v665_v24 = vpop.permute.xlu0 %664 }
 0x381   :  { %v667_v27 = vmul.f32 %v665_v24, %v662_v23 }
 0x383   :  { %v3986_v28 = vadd.f32 %v668_v25, %v667_v27 }
 0x385   :  { %671 = vrot.lane.b32.xlu1 %v3986_v28, %s3784_s4  ;;  %v937_v15 = vrot.slane %v3986_v28, 6 }
 0x389   :  { %823 = vrot.lane.b32.xlu1 %v812_v33, %s3782_s21 }
 0x3f7   :  { %v672_v35 = vpop.permute.xlu1 %671 }
 0x3f8   :  { %3507 = vmatmul.mubr.msk.f32.vlgmr.msra.gmra.mxu0 %vm400_vm2, %v672_v35 }
 0x3f9   :  { %3515 = vmatpush3.msra.mxu0 %v3926_v48  ;;  %3516 = vmatprep.mubr.msk.f32.mxu0 %vm3781_vm3, %v3779_v51 }
 0x3fa   :  { %3524 = vmatprep.subr.mxu0 %v3779_v51 }
 0x3fb   :  { %v824_v52 = vpop.permute.xlu1 %823 }
 0x3fc   :  { %3517 = vmatmul.mubr.msk.f32.vlgmr.msra.gmra.mxu0 %vm400_vm2, %v672_v35 }
 0x3fd   :  { %3525 = vmatpush3.msra.mxu0 %v3969_v20  ;;  %3526 = vmatprep.mubr.msk.f32.mxu0 %vm3781_vm3, %v3779_v51 }
 0x3fe   :  { %3534 = vmatprep.subr.mxu0 %v3779_v51 }
 0x4b8   :  { %v741_v38 = vpop.f32.mrf.mxu0 }
 0x4b9   :  { %v742_v39 = vadd.f32 %v741_v38, %v4008_v37 }
 0x4ba   :  { %v3508_v40 = vpop.f32.mrf.mxu0 }
 0x4bb   :  { %v815_v41 = vadd.f32 %v812_v33, %v742_v39 }
 0x4bc   :  { %v907_v42 = vpop.f32.mrf.mxu0 }
 0x4bd   :  { %v3376_v43 = vmul.f32 -1.442695, %v815_v41  ;;  %v908_v44 = vadd.f32 %v907_v42, %v3947_v57 }
 0x4be   :  { %v3518_v45 = vpop.f32.mrf.mxu0 }
 0x4bf   :  { %3663 = vpow2.f32 %v3376_v43  ;;  %v912_v46 = vrot.slane %v908_v44, 6 }
 0x4c1   :  { %921 = vrot.lane.b32.xlu0 %v912_v46, %s3782_s21  ;;  %v914_v55 = vadd.f32 %v912_v46, %v3961_v10 }
 0x4c3   :  { %v3378_v56 = vmul.f32 -1.442695, %v914_v55 }
 0x4cc   :  { %v3664_v47 = vpop.eup %3663 }
 0x4cd   :  { %v819_v49 = vadd.f32 1.0, %v3664_v47 }
 0x4cf   :  { %3665 = vrcp.f32 %v819_v49 }
 0x4d0   :  { %3667 = vpow2.f32 %v3378_v56 }
 0x4dc   :  { %v3666_v32 = vpop.eup %3665 }
 0x4dd   :  { %v826_v53 = vmul.f32 %v3666_v32, %v824_v52  ;;  %v3668_v58 = vpop.eup %3667  ;;  %v833_v9 = vsub.f32 1.0, %v3666_v32  ;;  %v839_v12 = vmul.f32 0.0, %v3666_v32 }
 0x4de   :  { %v918_v59 = vadd.f32 1.0, %v3668_v58 }
 0x4df   :  { %828 = vrot.lane.b32.xlu1 %v826_v53, %s3783_s22 }
 0x4e0   :  { %3669 = vrcp.f32 %v918_v59 }
 0x4ed   :  { %v3670_v60 = vpop.eup %3669 }
 0x4ee   :  { %v931_v16 = vsub.f32 1.0, %v3670_v60  ;;  %v939_v19 = vmul.f32 %v3670_v60, %v937_v15 }
 0x533   :  { %v922_v61 = vpop.permute.xlu0 %921 }
 0x534   :  { %v924_v62 = vmul.f32 %v3670_v60, %v922_v61 }
 0x536   :  { %926 = vrot.lane.b32.xlu0 %v924_v62, %s3783_s22 }
 0x551   :  { %v829_v63 = vpop.permute.xlu1 %828 }
 0x552   :  { %v831_v0 = vadd.f32 %v829_v63, %v742_v39 }
 0x554   :  { %3671 = vtanh.f32 %v831_v0 }
 0x561   :  { %v3672_v1 = vpop.eup %3671 }
 0x562   :  { %835 = vrot.lane.b32.xlu1 %v3672_v1, %s3784_s4 }
 0x5a8   :  { %v927_v2 = vpop.permute.xlu0 %926 }
 0x5a9   :  { %v929_v5 = vadd.f32 %v927_v2, %v3961_v10 }
 0x5ab   :  { %3673 = vtanh.f32 %v929_v5 }
 0x5b8   :  { %v3674_v7 = vpop.eup %3673 }
 0x5b9   :  { %933 = vrot.lane.b32.xlu0 %v3674_v7, %s3784_s4 }
 0x5d4   :  { %v836_v11 = vpop.permute.xlu1 %835 }
 0x5d5   :  { %v838_v13 = vmul.f32 %v836_v11, %v833_v9 }
 0x5d7   :  { %v4019_v14 = vadd.f32 %v839_v12, %v838_v13 }
 0x5d9   :  { %1018 = vrot.lane.b32.xlu1 %v4019_v14, %s3784_s4 }
 0x62b   :  { %v934_v17 = vpop.permute.xlu0 %933 }
 0x62c   :  { %v936_v18 = vmul.f32 %v934_v17, %v931_v16 }
 0x62e   :  { %v4024_v22 = vadd.f32 %v939_v19, %v936_v18 }
 0x630   :  { %v942_v23 = vrot.slane %v4024_v22, 2  ;;  %v1214_v9 = vrot.slane %v4024_v22, 6 }
 0x632   :  { %943 = vrot.lane.b32.xlu0 %v942_v23, %s3784_s4 }
 0x64b   :  { %v1019_v24 = vpop.permute.xlu1 %1018 }
 0x64c   :  { %3527 = vmatmul.mubr.msk.f32.vlgmr.msra.gmra.mxu0 %vm400_vm2, %v1019_v24 }
 0x64d   :  { %3535 = vmatpush3.msra.mxu0 %v3974_v21  ;;  %3536 = vmatprep.mubr.msk.f32.mxu0 %vm3781_vm3, %v3779_v51 }
 0x64e   :  { %3544 = vmatprep.subr.mxu0 %v3779_v51 }
 0x6a4   :  { %v944_v25 = vpop.permute.xlu0 %943 }
 0x6a5   :  { %3522 = vmatmul.mubr.msk.f32.vlgmr.msra.gmra.mxu1 %vm400_vm2, %v944_v25 }
 0x6a6   :  { %3530 = vmatpush3.msra.mxu1 %v3926_v48  ;;  %3531 = vmatprep.mubr.msk.f32.mxu1 %vm3781_vm3, %v3779_v51 }
 0x6a7   :  { %3539 = vmatprep.subr.mxu1 %v3779_v51 }
 0x6a9   :  { %3532 = vmatmul.mubr.msk.f32.vlgmr.msra.gmra.mxu1 %vm400_vm2, %v944_v25 }
 0x6aa   :  { %3540 = vmatpush3.msra.mxu1 %v3969_v20  ;;  %3541 = vmatprep.mubr.msk.f32.mxu1 %vm3781_vm3, %v3779_v51 }
 0x6ab   :  { %3549 = vmatprep.subr.mxu1 %v3779_v51 }
 0x70c   :  { %v1088_v27 = vpop.f32.mrf.mxu0 }
 0x70d   :  { %v1089_v28 = vadd.f32 %v1088_v27, %v3992_v30 }
 0x70e   :  { %v3528_v29 = vpop.f32.mrf.mxu0 }
 0x70f   :  { %1100 = vrot.lane.b32.xlu1 %v1089_v28, %s3782_s21 }
 0x765   :  { %v1013_v31 = vpop.f32.mrf.mxu1 }
 0x766   :  { %v1014_v33 = vadd.f32 %v1013_v31, %v4008_v37 }
 0x767   :  { %v3523_v34 = vpop.f32.mrf.mxu1 }
 0x768   :  { %v1092_v35 = vadd.f32 %v1089_v28, %v1014_v33 }
 0x769   :  { %v1184_v36 = vpop.f32.mrf.mxu1 }
 0x76a   :  { %v3381_v38 = vmul.f32 -1.442695, %v1092_v35  ;;  %v1185_v39 = vadd.f32 %v1184_v36, %v3947_v57 }
 0x76b   :  { %v3533_v40 = vpop.f32.mrf.mxu1 }
 0x76c   :  { %3675 = vpow2.f32 %v3381_v38  ;;  %v1189_v41 = vrot.slane %v1185_v39, 4 }
 0x76e   :  { %1198 = vrot.lane.b32.xlu0 %v1189_v41, %s3782_s21  ;;  %v1191_v47 = vadd.f32 %v1189_v41, %v3961_v10 }
 0x770   :  { %v3383_v49 = vmul.f32 -1.442695, %v1191_v47 }
 0x779   :  { %v3676_v42 = vpop.eup %3675 }
 0x77a   :  { %v1096_v43 = vadd.f32 1.0, %v3676_v42 }
 0x77c   :  { %3677 = vrcp.f32 %v1096_v43 }
 0x77d   :  { %3679 = vpow2.f32 %v3383_v49 }
 0x781   :  { %v1101_v45 = vpop.permute.xlu1 %1100 }
 0x789   :  { %v3678_v44 = vpop.eup %3677 }
 0x78a   :  { %v1103_v46 = vmul.f32 %v3678_v44, %v1101_v45  ;;  %v3680_v52 = vpop.eup %3679  ;;  %v1110_v0 = vsub.f32 1.0, %v3678_v44  ;;  %v1116_v2 = vmul.f32 %v3678_v44, %v4019_v14 }
 0x78b   :  { %v1195_v32 = vadd.f32 1.0, %v3680_v52 }
 0x78c   :  { %1105 = vrot.lane.b32.xlu1 %v1103_v46, %s3783_s22 }
 0x78d   :  { %3681 = vrcp.f32 %v1195_v32 }
 0x79a   :  { %v3682_v53 = vpop.eup %3681 }
 0x79b   :  { %v1208_v11 = vsub.f32 1.0, %v3682_v53  ;;  %v1216_v13 = vmul.f32 %v3682_v53, %v1214_v9 }
 0x7e0   :  { %v1199_v55 = vpop.permute.xlu0 %1198 }
 0x7e1   :  { %v1201_v56 = vmul.f32 %v3682_v53, %v1199_v55 }
 0x7e3   :  { %1203 = vrot.lane.b32.xlu0 %v1201_v56, %s3783_s22 }
 0x7fe   :  { %v1106_v58 = vpop.permute.xlu1 %1105 }
 0x7ff   :  { %v1108_v59 = vadd.f32 %v1106_v58, %v1014_v33 }
 0x801   :  { %3683 = vtanh.f32 %v1108_v59 }
 0x80e   :  { %v3684_v60 = vpop.eup %3683 }
 0x80f   :  { %1112 = vrot.lane.b32.xlu1 %v3684_v60, %s3784_s4 }
 0x855   :  { %v1204_v61 = vpop.permute.xlu0 %1203 }
 0x856   :  { %v1206_v62 = vadd.f32 %v1204_v61, %v3961_v10 }
 0x858   :  { %3685 = vtanh.f32 %v1206_v62 }
 0x865   :  { %v3686_v63 = vpop.eup %3685 }
 0x866   :  { %1210 = vrot.lane.b32.xlu0 %v3686_v63, %s3784_s4 }
 0x881   :  { %v1113_v1 = vpop.permute.xlu1 %1112 }
 0x882   :  { %v1115_v5 = vmul.f32 %v1113_v1, %v1110_v0 }
 0x884   :  { %v4055_v7 = vadd.f32 %v1116_v2, %v1115_v5 }
 0x886   :  { %1295 = vrot.lane.b32.xlu1 %v4055_v7, %s3784_s4 }
 0x8d8   :  { %v1211_v12 = vpop.permute.xlu0 %1210 }
 0x8d9   :  { %v1213_v15 = vmul.f32 %v1211_v12, %v1208_v11 }
 0x8db   :  { %v4060_v16 = vadd.f32 %v1216_v13, %v1213_v15 }
 0x8dd   :  { %v1219_v17 = vrot.slane %v4060_v16, 4  ;;  %v1491_v0 = vrot.slane %v4060_v16, 6 }
 0x8df   :  { %1220 = vrot.lane.b32.xlu0 %v1219_v17, %s3784_s4 }
 0x8f8   :  { %v1296_v18 = vpop.permute.xlu1 %1295 }
 0x8f9   :  { %3542 = vmatmul.mubr.msk.f32.vlgmr.msra.gmra.mxu1 %vm400_vm2, %v1296_v18 }
 0x8fa   :  { %3550 = vmatpush3.msra.mxu1 %v3974_v21  ;;  %3551 = vmatprep.mubr.msk.f32.mxu1 %vm3781_vm3, %v3779_v51 }
 0x8fb   :  { %3559 = vmatprep.subr.mxu1 %v3779_v51 }
 0x951   :  { %v1221_v14 = vpop.permute.xlu0 %1220 }
 0x952   :  { %3537 = vmatmul.mubr.msk.f32.vlgmr.msra.gmra.mxu0 %vm400_vm2, %v1221_v14 }
 0x953   :  { %3545 = vmatpush3.msra.mxu0 %v3926_v48  ;;  %3546 = vmatprep.mubr.msk.f32.mxu0 %vm3781_vm3, %v3779_v51 }
 0x954   :  { %3554 = vmatprep.subr.mxu0 %v3779_v51 }
 0x956   :  { %3547 = vmatmul.mubr.msk.f32.vlgmr.msra.gmra.mxu0 %vm400_vm2, %v1221_v14 }
 0x957   :  { %3555 = vmatpush3.msra.mxu0 %v3969_v20  ;;  %3556 = vmatprep.mubr.msk.f32.mxu0 %vm3781_vm3, %v3779_v51 }
 0x958   :  { %3564 = vmatprep.subr.mxu0 %v3779_v51 }
 0x9b9   :  { %v1365_v19 = vpop.f32.mrf.mxu1 }
 0x9ba   :  { %v1366_v22 = vadd.f32 %v1365_v19, %v3992_v30 }
 0x9bb   :  { %v3543_v23 = vpop.f32.mrf.mxu1 }
 0x9bc   :  { %1377 = vrot.lane.b32.xlu1 %v1366_v22, %s3782_s21 }
 0xa12   :  { %v1290_v24 = vpop.f32.mrf.mxu0 }
 0xa13   :  { %v1291_v25 = vadd.f32 %v1290_v24, %v4008_v37 }
 0xa14   :  { %v3538_v27 = vpop.f32.mrf.mxu0 }
 0xa15   :  { %v1369_v28 = vadd.f32 %v1366_v22, %v1291_v25 }
 0xa16   :  { %v1461_v29 = vpop.f32.mrf.mxu0 }
 0xa17   :  { %v3386_v31 = vmul.f32 -1.442695, %v1369_v28  ;;  %v1462_v33 = vadd.f32 %v1461_v29, %v3947_v57 }
 0xa18   :  { %v3548_v34 = vpop.f32.mrf.mxu0 }
 0xa19   :  { %3687 = vpow2.f32 %v3386_v31  ;;  %v1466_v35 = vrot.slane %v1462_v33, 2 }
 0xa1b   :  { %1475 = vrot.lane.b32.xlu0 %v1466_v35, %s3782_s21  ;;  %v1468_v42 = vadd.f32 %v1466_v35, %v3961_v10 }
 0xa1d   :  { %v3388_v43 = vmul.f32 -1.442695, %v1468_v42 }
 0xa26   :  { %v3688_v36 = vpop.eup %3687 }
 0xa27   :  { %v1373_v38 = vadd.f32 1.0, %v3688_v36 }
 0xa29   :  { %3689 = vrcp.f32 %v1373_v38 }
 0xa2a   :  { %3691 = vpow2.f32 %v3388_v43 }
 0xa2e   :  { %v1378_v40 = vpop.permute.xlu1 %1377 }
 0xa36   :  { %v3690_v39 = vpop.eup %3689 }
 0xa37   :  { %v1380_v41 = vmul.f32 %v3690_v39, %v1378_v40  ;;  %v3692_v44 = vpop.eup %3691  ;;  %v1387_v59 = vsub.f32 1.0, %v3690_v39  ;;  %v1393_v61 = vmul.f32 %v3690_v39, %v4055_v7 }
 0xa38   :  { %v1472_v45 = vadd.f32 1.0, %v3692_v44 }
 0xa39   :  { %1382 = vrot.lane.b32.xlu1 %v1380_v41, %s3783_s22 }
 0xa3a   :  { %3693 = vrcp.f32 %v1472_v45 }
 0xa47   :  { %v3694_v46 = vpop.eup %3693 }
 0xa48   :  { %v1485_v1 = vsub.f32 1.0, %v3694_v46  ;;  %v1493_v5 = vmul.f32 %v3694_v46, %v1491_v0 }
 0xa8d   :  { %v1476_v47 = vpop.permute.xlu0 %1475 }
 0xa8e   :  { %v1478_v49 = vmul.f32 %v3694_v46, %v1476_v47 }
 0xa90   :  { %1480 = vrot.lane.b32.xlu0 %v1478_v49, %s3783_s22 }
 0xaab   :  { %v1383_v52 = vpop.permute.xlu1 %1382 }
 0xaac   :  { %v1385_v32 = vadd.f32 %v1383_v52, %v1291_v25 }
 0xaae   :  { %3695 = vtanh.f32 %v1385_v32 }
 0xabb   :  { %v3696_v53 = vpop.eup %3695 }
 0xabc   :  { %1389 = vrot.lane.b32.xlu1 %v3696_v53, %s3784_s4 }
 0xb02   :  { %v1481_v55 = vpop.permute.xlu0 %1480 }
 0xb03   :  { %v1483_v56 = vadd.f32 %v1481_v55, %v3961_v10 }
 0xb05   :  { %3697 = vtanh.f32 %v1483_v56 }
 0xb12   :  { %v3698_v58 = vpop.eup %3697 }
 0xb13   :  { %1487 = vrot.lane.b32.xlu0 %v3698_v58, %s3784_s4 }
 0xb2e   :  { %v1390_v60 = vpop.permute.xlu1 %1389 }
 0xb2f   :  { %v1392_v62 = vmul.f32 %v1390_v60, %v1387_v59 }
 0xb31   :  { %v4091_v63 = vadd.f32 %v1393_v61, %v1392_v62 }
 0xb33   :  { %1572 = vrot.lane.b32.xlu1 %v4091_v63, %s3784_s4 }
 0xb85   :  { %v1488_v2 = vpop.permute.xlu0 %1487 }
 0xb86   :  { %v1490_v10 = vmul.f32 %v1488_v2, %v1485_v1 }
 0xb88   :  { %v4096_v9 = vadd.f32 %v1493_v5, %v1490_v10 }
 0xb8a   :  { %v1496_v11 = vrot.slane %v4096_v9, 6 }
 0xb8c   :  { %1497 = vrot.lane.b32.xlu0 %v1496_v11, %s3784_s4 }
 0xba5   :  { %v1573_v7 = vpop.permute.xlu1 %1572 }
 0xba6   :  { %3557 = vmatmul.mubr.msk.f32.vlgmr.msra.gmra.mxu0 %vm400_vm2, %v1573_v7 }
 0xba7   :  { %3565 = vmatpush3.msra.mxu0 %v3974_v21  ;;  %3566 = vmatprep.mubr.msk.f32.mxu0 %vm3781_vm3, %v3779_v51 }
 0xba8   :  { %3574 = vmatprep.subr.mxu0 %v3779_v51 }
 0xbfe   :  { %v1498_v12 = vpop.permute.xlu0 %1497 }
 0xbff   :  { %3552 = vmatmul.mubr.msk.f32.vlgmr.msra.gmra.mxu1 %vm400_vm2, %v1498_v12 }
 0xc00   :  { %3560 = vmatpush3.msra.mxu1 %v3926_v48  ;;  %3561 = vmatprep.mubr.msk.f32.mxu1 %vm3781_vm3, %v3779_v51 }
 0xc01   :  { %3569 = vmatprep.subr.mxu1 %v3779_v51 }
 0xc03   :  { %3562 = vmatmul.mubr.msk.f32.vlgmr.msra.gmra.mxu1 %vm400_vm2, %v1498_v12 }
 0xc04   :  { %3570 = vmatpush3.msra.mxu1 %v3969_v20  ;;  %3571 = vmatprep.mubr.msk.f32.mxu1 %vm3781_vm3, %v3779_v51 }
 0xc05   :  { %3579 = vmatprep.subr.mxu1 %v3779_v51 }
 0xc66   :  { %v1642_v13 = vpop.f32.mrf.mxu0 }
 0xc67   :  { %v1643_v15 = vadd.f32 %v1642_v13, %v3992_v30 }
 0xc68   :  { %v3558_v16 = vpop.f32.mrf.mxu0 }
 0xc69   :  { %1654 = vrot.lane.b32.xlu0 %v1643_v15, %s3782_s21 }
 0xcbf   :  { %v1567_v17 = vpop.f32.mrf.mxu1 }
 0xcc0   :  { %v1568_v18 = vadd.f32 %v1567_v17, %v4008_v37 }
 0xcc1   :  { %v3553_v14 = vpop.f32.mrf.mxu1 }
 0xcc2   :  { %v1646_v19 = vadd.f32 %v1643_v15, %v1568_v18 }
 0xcc3   :  { %v1738_v22 = vpop.f32.mrf.mxu1 }
 0xcc4   :  { %v3391_v23 = vmul.f32 -1.442695, %v1646_v19  ;;  %v1739_v24 = vadd.f32 %v1738_v22, %v3947_v57 }
 0xcc5   :  { %v3563_v25 = vpop.f32.mrf.mxu1 }
 0xcc6   :  { %3699 = vpow2.f32 %v3391_v23  ;;  %1750 = vrot.lane.b32.xlu1 %v1739_v24, %s3782_s21  ;;  %v1742_v34 = vadd.f32 %v1739_v24, %v3959_v8 }
 0xcc8   :  { %v3393_v35 = vmul.f32 -1.442695, %v1742_v34 }
 0xcd3   :  { %v3700_v27 = vpop.eup %3699 }
 0xcd4   :  { %v1650_v28 = vadd.f32 1.0, %v3700_v27 }
 0xcd6   :  { %3701 = vrcp.f32 %v1650_v28 }
 0xcd7   :  { %3703 = vpow2.f32 %v3393_v35 }
 0xcdb   :  { %v1655_v31 = vpop.permute.xlu0 %1654 }
 0xce3   :  { %v3702_v29 = vpop.eup %3701 }
 0xce4   :  { %v1657_v33 = vmul.f32 %v3702_v29, %v1655_v31  ;;  %v3704_v36 = vpop.eup %3703  ;;  %v1664_v49 = vsub.f32 1.0, %v3702_v29  ;;  %v1670_v32 = vmul.f32 %v3702_v29, %v4091_v63 }
 0xce5   :  { %v1746_v38 = vadd.f32 1.0, %v3704_v36 }
 0xce6   :  { %1659 = vrot.lane.b32.xlu0 %v1657_v33, %s3783_s22 }
 0xce7   :  { %3705 = vrcp.f32 %v1746_v38 }
 0xcf4   :  { %v3706_v39 = vpop.eup %3705 }
 0xcf5   :  { %v1760_v56 = vsub.f32 1.0, %v3706_v39  ;;  %v1767_v59 = vmul.f32 %v3706_v39, %v1496_v11 }
 0xd38   :  { %v1751_v40 = vpop.permute.xlu1 %1750 }
 0xd39   :  { %v1753_v41 = vmul.f32 %v3706_v39, %v1751_v40 }
 0xd3b   :  { %1755 = vrot.lane.b32.xlu1 %v1753_v41, %s3783_s22 }
 0xd58   :  { %v1660_v42 = vpop.permute.xlu0 %1659 }
 0xd59   :  { %v1662_v43 = vadd.f32 %v1660_v42, %v1568_v18 }
 0xd5b   :  { %3707 = vtanh.f32 %v1662_v43 }
 0xd68   :  { %v3708_v44 = vpop.eup %3707 }
 0xd69   :  { %1666 = vrot.lane.b32.xlu0 %v3708_v44, %s3784_s4 }
 0xdad   :  { %v1756_v45 = vpop.permute.xlu1 %1755 }
 0xdae   :  { %v1758_v46 = vadd.f32 %v1756_v45, %v3959_v8 }
 0xdb0   :  { %3709 = vtanh.f32 %v1758_v46 }
 0xdbd   :  { %v3710_v47 = vpop.eup %3709 }
 0xdbe   :  { %1762 = vrot.lane.b32.xlu1 %v3710_v47, %s3784_s4 }
 0xddb   :  { %v1667_v52 = vpop.permute.xlu0 %1666 }
 0xddc   :  { %v1669_v53 = vmul.f32 %v1667_v52, %v1664_v49 }
 0xdde   :  { %v4129_v55 = vadd.f32 %v1670_v32, %v1669_v53 }
 0xde0   :  { %1845 = vrot.lane.b32.xlu1 %v4129_v55, %s3784_s4 }
 0xe30   :  { %v1763_v58 = vpop.permute.xlu1 %1762 }
 0xe31   :  { %v1765_v60 = vmul.f32 %v1763_v58, %v1760_v56 }
 0xe33   :  { %v4135_v61 = vadd.f32 %v1767_v59, %v1765_v60 }
 0xe35   :  { %1770 = vrot.lane.b32.xlu0 %v4135_v61, %s3784_s4  ;;  %v2041_v45 = vrot.slane %v4135_v61, 6 }
 0xe52   :  { %v1846_v62 = vpop.permute.xlu1 %1845 }
 0xe53   :  { %3572 = vmatmul.mubr.msk.f32.vlgmr.msra.gmra.mxu1 %vm400_vm2, %v1846_v62 }
 0xe54   :  { %3580 = vmatpush3.msra.mxu1 %v3974_v21  ;;  %3581 = vmatprep.mubr.msk.f32.mxu1 %vm3781_vm3, %v3779_v51 }
 0xe55   :  { %3589 = vmatprep.subr.mxu1 %v3779_v51 }
 0xea7   :  { %v1771_v63 = vpop.permute.xlu0 %1770 }
 0xea8   :  { %3567 = vmatmul.mubr.msk.f32.vlgmr.msra.gmra.mxu0 %vm400_vm2, %v1771_v63 }
 0xea9   :  { %3575 = vmatpush3.msra.mxu0 %v3926_v48  ;;  %3576 = vmatprep.mubr.msk.f32.mxu0 %vm3781_vm3, %v3779_v51 }
 0xeaa   :  { %3584 = vmatprep.subr.mxu0 %v3779_v51 }
 0xeac   :  { %3577 = vmatmul.mubr.msk.f32.vlgmr.msra.gmra.mxu0 %vm400_vm2, %v1771_v63 }
 0xead   :  { %3585 = vmatpush3.msra.mxu0 %v3969_v20  ;;  %3586 = vmatprep.mubr.msk.f32.mxu0 %vm3781_vm3, %v3779_v51 }
 0xeae   :  { %3594 = vmatprep.subr.mxu0 %v3779_v51 }
 0xf13   :  { %v1915_v0 = vpop.f32.mrf.mxu1 }
 0xf14   :  { %v1916_v1 = vadd.f32 %v1915_v0, %v3992_v30 }
 0xf15   :  { %v3573_v2 = vpop.f32.mrf.mxu1 }
 0xf16   :  { %1927 = vrot.lane.b32.xlu0 %v1916_v1, %s3782_s21 }
 0xf68   :  { %v1840_v5 = vpop.f32.mrf.mxu0 }
 0xf69   :  { %v1841_v10 = vadd.f32 %v1840_v5, %v4008_v37 }
 0xf6a   :  { %v3568_v9 = vpop.f32.mrf.mxu0 }
 0xf6b   :  { %v1919_v11 = vadd.f32 %v1916_v1, %v1841_v10 }
 0xf6c   :  { %v2011_v7 = vpop.f32.mrf.mxu0 }
 0xf6d   :  { %v3396_v12 = vmul.f32 -1.442695, %v1919_v11  ;;  %v2012_v13 = vadd.f32 %v2011_v7, %v3947_v57 }
 0xf6e   :  { %v3578_v15 = vpop.f32.mrf.mxu0 }
 0xf6f   :  { %3711 = vpow2.f32 %v3396_v12  ;;  %v2016_v16 = vrot.slane %v2012_v13, 6 }
 0xf71   :  { %2025 = vrot.lane.b32.xlu1 %v2016_v16, %s3782_s21  ;;  %v2018_v23 = vadd.f32 %v2016_v16, %v3959_v8 }
 0xf73   :  { %v3398_v24 = vmul.f32 -1.442695, %v2018_v23 }
 0xf7c   :  { %v3712_v17 = vpop.eup %3711 }
 0xf7d   :  { %v1923_v18 = vadd.f32 1.0, %v3712_v17 }
 0xf7f   :  { %3713 = vrcp.f32 %v1923_v18 }
 0xf80   :  { %3715 = vpow2.f32 %v3398_v24 }
 0xf88   :  { %v1928_v19 = vpop.permute.xlu0 %1927 }
 0xf8c   :  { %v3714_v14 = vpop.eup %3713 }
 0xf8d   :  { %v1930_v22 = vmul.f32 %v3714_v14, %v1928_v19  ;;  %v3716_v25 = vpop.eup %3715  ;;  %v1937_v40 = vsub.f32 1.0, %v3714_v14  ;;  %v1943_v42 = vmul.f32 %v3714_v14, %v4129_v55 }
 0xf8e   :  { %v2022_v27 = vadd.f32 1.0, %v3716_v25 }
 0xf8f   :  { %1932 = vrot.lane.b32.xlu0 %v1930_v22, %s3783_s22 }
 0xf90   :  { %3717 = vrcp.f32 %v2022_v27 }
 0xf9d   :  { %v3718_v28 = vpop.eup %3717 }
 0xf9e   :  { %v2035_v46 = vsub.f32 1.0, %v3718_v28  ;;  %v2043_v49 = vmul.f32 %v3718_v28, %v2041_v45 }
 0xfe3   :  { %v2026_v29 = vpop.permute.xlu1 %2025 }
 0xfe4   :  { %v2028_v31 = vmul.f32 %v3718_v28, %v2026_v29 }
 0xfe6   :  { %2030 = vrot.lane.b32.xlu1 %v2028_v31, %s3783_s22 }
0x1001   :  { %v1933_v33 = vpop.permute.xlu0 %1932 }
0x1002   :  { %v1935_v34 = vadd.f32 %v1933_v33, %v1841_v10 }
0x1004   :  { %3719 = vtanh.f32 %v1935_v34 }
0x1011   :  { %v3720_v35 = vpop.eup %3719 }
0x1012   :  { %1939 = vrot.lane.b32.xlu0 %v3720_v35, %s3784_s4 }
0x1058   :  { %v2031_v36 = vpop.permute.xlu1 %2030 }
0x1059   :  { %v2033_v38 = vadd.f32 %v2031_v36, %v3959_v8 }
0x105b   :  { %3721 = vtanh.f32 %v2033_v38 }
0x1068   :  { %v3722_v39 = vpop.eup %3721 }
0x1069   :  { %2037 = vrot.lane.b32.xlu1 %v3722_v39, %s3784_s4 }
0x1084   :  { %v1940_v41 = vpop.permute.xlu0 %1939 }
0x1085   :  { %v1942_v43 = vmul.f32 %v1940_v41, %v1937_v40 }
0x1087   :  { %v4166_v44 = vadd.f32 %v1943_v42, %v1942_v43 }
0x1089   :  { %2122 = vrot.lane.b32.xlu0 %v4166_v44, %s3784_s4 }
0x10db   :  { %v2038_v47 = vpop.permute.xlu1 %2037 }
0x10dc   :  { %v2040_v52 = vmul.f32 %v2038_v47, %v2035_v46 }
0x10de   :  { %v4171_v32 = vadd.f32 %v2043_v49, %v2040_v52 }
0x10e0   :  { %v2046_v53 = vrot.slane %v4171_v32, 2  ;;  %v2318_v39 = vrot.slane %v4171_v32, 6 }
0x10e2   :  { %2047 = vrot.lane.b32.xlu1 %v2046_v53, %s3784_s4 }
0x10fb   :  { %v2123_v56 = vpop.permute.xlu0 %2122 }
0x10fc   :  { %3587 = vmatmul.mubr.msk.f32.vlgmr.msra.gmra.mxu0 %vm400_vm2, %v2123_v56 }
0x10fd   :  { %3595 = vmatpush3.msra.mxu0 %v3974_v21  ;;  %3596 = vmatprep.mubr.msk.f32.mxu0 %vm3781_vm3, %v3779_v51 }
0x10fe   :  { %3604 = vmatprep.subr.mxu0 %v3779_v51 }
0x1154   :  { %v2048_v55 = vpop.permute.xlu1 %2047 }
0x1155   :  { %3582 = vmatmul.mubr.msk.f32.vlgmr.msra.gmra.mxu1 %vm400_vm2, %v2048_v55 }
0x1156   :  { %3590 = vmatpush3.msra.mxu1 %v3926_v48  ;;  %3591 = vmatprep.mubr.msk.f32.mxu1 %vm3781_vm3, %v3779_v51 }
0x1157   :  { %3599 = vmatprep.subr.mxu1 %v3779_v51 }
0x1159   :  { %3592 = vmatmul.mubr.msk.f32.vlgmr.msra.gmra.mxu1 %vm400_vm2, %v2048_v55 }
0x115a   :  { %3600 = vmatpush3.msra.mxu1 %v3969_v20  ;;  %3601 = vmatprep.mubr.msk.f32.mxu1 %vm3781_vm3, %v3779_v51 }
0x115b   :  { %3609 = vmatprep.subr.mxu1 %v3779_v51 }
0x11bc   :  { %v2192_v58 = vpop.f32.mrf.mxu0 }
0x11bd   :  { %v2193_v59 = vadd.f32 %v2192_v58, %v3992_v30 }
0x11be   :  { %v3588_v60 = vpop.f32.mrf.mxu0 }
0x11bf   :  { %2204 = vrot.lane.b32.xlu0 %v2193_v59, %s3782_s21 }
0x1215   :  { %v2117_v61 = vpop.f32.mrf.mxu1 }
0x1216   :  { %v2118_v62 = vadd.f32 %v2117_v61, %v4008_v37 }
0x1217   :  { %v3583_v63 = vpop.f32.mrf.mxu1 }
0x1218   :  { %v2196_v0 = vadd.f32 %v2193_v59, %v2118_v62 }
0x1219   :  { %v2288_v1 = vpop.f32.mrf.mxu1 }
0x121a   :  { %v3401_v2 = vmul.f32 -1.442695, %v2196_v0  ;;  %v2289_v5 = vadd.f32 %v2288_v1, %v3947_v57 }
0x121b   :  { %v3593_v10 = vpop.f32.mrf.mxu1 }
0x121c   :  { %3723 = vpow2.f32 %v3401_v2  ;;  %v2293_v9 = vrot.slane %v2289_v5, 4 }
0x121e   :  { %2302 = vrot.lane.b32.xlu1 %v2293_v9, %s3782_s21  ;;  %v2295_v16 = vadd.f32 %v2293_v9, %v3959_v8 }
0x1220   :  { %v3403_v17 = vmul.f32 -1.442695, %v2295_v16 }
0x1229   :  { %v3724_v11 = vpop.eup %3723 }
0x122a   :  { %v2200_v7 = vadd.f32 1.0, %v3724_v11 }
0x122c   :  { %3725 = vrcp.f32 %v2200_v7 }
0x122d   :  { %3727 = vpow2.f32 %v3403_v17 }
0x1231   :  { %v2205_v13 = vpop.permute.xlu0 %2204 }
0x1239   :  { %v3726_v12 = vpop.eup %3725 }
0x123a   :  { %v2207_v15 = vmul.f32 %v3726_v12, %v2205_v13  ;;  %v3728_v18 = vpop.eup %3727  ;;  %v2214_v33 = vsub.f32 1.0, %v3726_v12  ;;  %v2220_v35 = vmul.f32 %v3726_v12, %v4166_v44 }
0x123b   :  { %v2299_v14 = vadd.f32 1.0, %v3728_v18 }
0x123c   :  { %2209 = vrot.lane.b32.xlu0 %v2207_v15, %s3783_s22 }
0x123d   :  { %3729 = vrcp.f32 %v2299_v14 }
0x124a   :  { %v3730_v19 = vpop.eup %3729 }
0x124b   :  { %v2312_v40 = vsub.f32 1.0, %v3730_v19  ;;  %v2320_v42 = vmul.f32 %v3730_v19, %v2318_v39 }
0x1290   :  { %v2303_v22 = vpop.permute.xlu1 %2302 }
0x1291   :  { %v2305_v23 = vmul.f32 %v3730_v19, %v2303_v22 }
0x1293   :  { %2307 = vrot.lane.b32.xlu1 %v2305_v23, %s3783_s22 }
0x12ae   :  { %v2210_v24 = vpop.permute.xlu0 %2209 }
0x12af   :  { %v2212_v25 = vadd.f32 %v2210_v24, %v2118_v62 }
0x12b1   :  { %3731 = vtanh.f32 %v2212_v25 }
0x12be   :  { %v3732_v27 = vpop.eup %3731 }
0x12bf   :  { %2216 = vrot.lane.b32.xlu0 %v3732_v27, %s3784_s4 }
0x1305   :  { %v2308_v28 = vpop.permute.xlu1 %2307 }
0x1306   :  { %v2310_v29 = vadd.f32 %v2308_v28, %v3959_v8 }
0x1308   :  { %3733 = vtanh.f32 %v2310_v29 }
0x1315   :  { %v3734_v31 = vpop.eup %3733 }
0x1316   :  { %2314 = vrot.lane.b32.xlu1 %v3734_v31, %s3784_s4 }
0x1331   :  { %v2217_v34 = vpop.permute.xlu0 %2216 }
0x1332   :  { %v2219_v36 = vmul.f32 %v2217_v34, %v2214_v33 }
0x1334   :  { %v4202_v38 = vadd.f32 %v2220_v35, %v2219_v36 }
0x1336   :  { %2399 = vrot.lane.b32.xlu0 %v4202_v38, %s3784_s4 }
0x1388   :  { %v2315_v41 = vpop.permute.xlu1 %2314 }
0x1389   :  { %v2317_v43 = vmul.f32 %v2315_v41, %v2312_v40 }
0x138b   :  { %v4207_v45 = vadd.f32 %v2320_v42, %v2317_v43 }
0x138d   :  { %v2323_v46 = vrot.slane %v4207_v45, 4  ;;  %v2595_v25 = vrot.slane %v4207_v45, 6 }
0x138f   :  { %2324 = vrot.lane.b32.xlu1 %v2323_v46, %s3784_s4 }
0x13a8   :  { %v2400_v47 = vpop.permute.xlu0 %2399 }
0x13a9   :  { %3602 = vmatmul.mubr.msk.f32.vlgmr.msra.gmra.mxu1 %vm400_vm2, %v2400_v47 }
0x13aa   :  { %3610 = vmatpush3.msra.mxu1 %v3974_v21  ;;  %3611 = vmatprep.mubr.msk.f32.mxu1 %vm3781_vm3, %v3779_v51 }
0x13ab   :  { %3619 = vmatprep.subr.mxu1 %v3779_v51 }
0x1401   :  { %v2325_v44 = vpop.permute.xlu1 %2324 }
0x1402   :  { %3597 = vmatmul.mubr.msk.f32.vlgmr.msra.gmra.mxu0 %vm400_vm2, %v2325_v44 }
0x1403   :  { %3605 = vmatpush3.msra.mxu0 %v3926_v48  ;;  %3606 = vmatprep.mubr.msk.f32.mxu0 %vm3781_vm3, %v3779_v51 }
0x1404   :  { %3614 = vmatprep.subr.mxu0 %v3779_v51 }
0x1406   :  { %3607 = vmatmul.mubr.msk.f32.vlgmr.msra.gmra.mxu0 %vm400_vm2, %v2325_v44  ;;  %v2934_v44 = vld [vmem:[%s4332_s2] sm:$0x3] }
0x1407   :  { %3615 = vmatpush3.msra.mxu0 %v3969_v20  ;;  %3616 = vmatprep.mubr.msk.f32.mxu0 %vm3781_vm3, %v3779_v51 }
0x1408   :  { %3624 = vmatprep.subr.mxu0 %v3779_v51 }
0x1469   :  { %v2469_v21 = vpop.f32.mrf.mxu1 }
0x146a   :  { %v2470_v49 = vadd.f32 %v2469_v21, %v3992_v30 }
0x146b   :  { %v3603_v52 = vpop.f32.mrf.mxu1 }
0x146c   :  { %2481 = vrot.lane.b32.xlu0 %v2470_v49, %s3782_s21 }
0x14c2   :  { %v2394_v48 = vpop.f32.mrf.mxu0 }
0x14c3   :  { %v2395_v32 = vadd.f32 %v2394_v48, %v4008_v37 }
0x14c4   :  { %v3598_v53 = vpop.f32.mrf.mxu0 }
0x14c5   :  { %v2473_v56 = vadd.f32 %v2470_v49, %v2395_v32 }
0x14c6   :  { %v2565_v55 = vpop.f32.mrf.mxu0 }
0x14c7   :  { %v3406_v58 = vmul.f32 -1.442695, %v2473_v56  ;;  %v2566_v20 = vadd.f32 %v2565_v55, %v3947_v57 }
0x14c8   :  { %v3608_v59 = vpop.f32.mrf.mxu0 }
0x14c9   :  { %3735 = vpow2.f32 %v3406_v58  ;;  %v2570_v60 = vrot.slane %v2566_v20, 2  ;;  %v2935_v20 = vld [vmem:[%s4332_s2 + $0x2] sm:$0x3] }
0x14cb   :  { %2579 = vrot.lane.b32.xlu1 %v2570_v60, %s3782_s21  ;;  %v2572_v2 = vadd.f32 %v2570_v60, %v3959_v8  ;;  %v2937_v60 = vld [vmem:[%s4332_s2 + $0x6] sm:$0x3] }
0x14cd   :  { %v3408_v5 = vmul.f32 -1.442695, %v2572_v2 }
0x14d6   :  { %v3736_v61 = vpop.eup %3735 }
0x14d7   :  { %v2477_v62 = vadd.f32 1.0, %v3736_v61 }
0x14d9   :  { %3737 = vrcp.f32 %v2477_v62 }
0x14da   :  { %3739 = vpow2.f32 %v3408_v5 }
0x14de   :  { %v2482_v0 = vpop.permute.xlu0 %2481 }
0x14e6   :  { %v3738_v63 = vpop.eup %3737 }
0x14e7   :  { %v2484_v1 = vmul.f32 %v3738_v63, %v2482_v0  ;;  %v3740_v10 = vpop.eup %3739  ;;  %v2491_v14 = vsub.f32 1.0, %v3738_v63  ;;  %v2497_v22 = vmul.f32 %v3738_v63, %v4202_v38 }
0x14e8   :  { %v2576_v9 = vadd.f32 1.0, %v3740_v10 }
0x14e9   :  { %2486 = vrot.lane.b32.xlu0 %v2484_v1, %s3783_s22  ;;  %v30_v1 = vld [vmem:[%s4333_s3 + $0x18] sm:$0xff] }
0x14ea   :  { %3741 = vrcp.f32 %v2576_v9 }
0x14f7   :  { %v3742_v57 = vpop.eup %3741 }
0x14f8   :  { %v2589_v27 = vsub.f32 1.0, %v3742_v57  ;;  %v2597_v29 = vmul.f32 %v3742_v57, %v2595_v25 }
0x153d   :  { %v2580_v11 = vpop.permute.xlu1 %2579 }
0x153e   :  { %v2582_v7 = vmul.f32 %v3742_v57, %v2580_v11  ;;  %v31_v11 = vld [vmem:[%s4333_s3 + $0x20] sm:$0xff] }
0x1540   :  { %2584 = vrot.lane.b32.xlu1 %v2582_v7, %s3783_s22 }
0x155b   :  { %v2487_v12 = vpop.permute.xlu0 %2486 }
0x155c   :  { %v2489_v13 = vadd.f32 %v2487_v12, %v2395_v32  ;;  %v2997_v12 = vrot.slane %v31_v11, %v3893_v54  ;;  %v33_v11 = vld [vmem:[%s4333_s3 + $0x30] sm:$0xff] }
0x155e   :  { %3743 = vtanh.f32 %v2489_v13  ;;  %v3026_v13 = vsub.s32 7, %v3843_v6 }
0x156b   :  { %v3744_v15 = vpop.eup %3743 }
0x156c   :  { %2493 = vrot.lane.b32.xlu0 %v3744_v15, %s3784_s4 }
0x15b2   :  { %v2585_v16 = vpop.permute.xlu1 %2584 }
0x15b3   :  { %v2587_v17 = vadd.f32 %v2585_v16, %v3959_v8  ;;  %v2999_v16 = vcombine.high %v2997_v12, %v2997_v12 }
0x15b5   :  { %3745 = vtanh.f32 %v2587_v17  ;;  %v3754_v17 = vld [vmem:[%s4335_s5] sm:$0xff] }
0x15c2   :  { %v3746_v18 = vpop.eup %3745 }
0x15c3   :  { %2591 = vrot.lane.b32.xlu1 %v3746_v18, %s3784_s4  ;;  %v3027_v18 = vrot.slane %v3754_v17, %v3026_v13 }
0x15de   :  { %v2494_v19 = vpop.permute.xlu0 %2493 }
0x15df   :  { %v2496_v23 = vmul.f32 %v2494_v19, %v2491_v14  ;;  %v3013_v19 = vrot.slane %v2999_v16, %v3870_v26 }
0x15e1   :  { %v2498_v24 = vadd.f32 %v2497_v22, %v2496_v23  ;;  %v3029_v22 = vcombine.high %v3027_v18, %v3027_v18  ;;  %v3015_v25 = vcombine.high %v3013_v19, %v3013_v19 }
0x15e3   :  { %2676 = vrot.lane.b32.xlu0 %v2498_v24, %s3784_s4 }
0x1635   :  { %v2592_v28 = vpop.permute.xlu1 %2591 }
0x1636   :  { %v2594_v31 = vmul.f32 %v2592_v28, %v2589_v27  ;;  %v3043_v28 = vrot.slane %v3029_v22, %v3870_v26 }
0x1638   :  { %v2598_v33 = vadd.f32 %v2597_v29, %v2594_v31 }
0x163a   :  { %v2600_v8 = vrot.slane %v2598_v33, 6 }
0x163c   :  { %2601 = vrot.lane.b32.xlu1 %v2600_v8, %s3784_s4  ;;  %v3036_v8 = vrot.slane %v3027_v18, %v3870_v26 }
0x1655   :  { %v2677_v34 = vpop.permute.xlu0 %2676 }
0x1656   :  { %3617 = vmatmul.mubr.msk.f32.vlgmr.msra.gmra.mxu0 %vm400_vm2, %v2677_v34 }
0x1657   :  { %3626 = vmatprep.mubr.msk.f32.mxu0 %vm3781_vm3, %v3779_v51 }
0x16ae   :  { %v2602_v35 = vpop.permute.xlu1 %2601 }
0x16af   :  { %3612 = vmatmul.mubr.msk.f32.vlgmr.msra.gmra.mxu1 %vm400_vm2, %v2602_v35  ;;  %v3045_v35 = vcombine.high %v3043_v28, %v3043_v28 }
0x16b0   :  { %3621 = vmatprep.mubr.msk.f32.mxu1 %vm3781_vm3, %v3779_v51  ;;  %3620 = vmatpush3.msra.mxu1 %v30_v1 }
0x16b1   :  { %3629 = vmatprep.subr.mxu1 %v3779_v51 }
0x1716   :  { %v2746_v36 = vpop.f32.mrf.mxu0 }
0x1717   :  { %v2747_v38 = vadd.f32 %v2746_v36, %v3992_v30  ;;  %v3753_v30 = vld [vmem:[%s4330_s0] sm:$0x3] }
0x1718   :  { %v3618_v39 = vpop.f32.mrf.mxu0  ;;  %v2938_v21 = vsub.f32 %v2934_v44, %v3753_v30  ;;  %v2939_v59 = vsub.f32 %v2935_v20, %v3753_v30  ;;  %v2941_v63 = vsub.f32 %v2937_v60, %v3753_v30  ;;  %v2778_v60 = vsub.s32 6, %v3843_v6 }
0x1719   :  { %2758 = vrot.lane.b32.xlu0 %v2747_v38, %s3782_s21  ;;  %v3044_v39 = vcombine.high %v3036_v8, %v3036_v8 }
0x171a   :  { %v2942_v32 = vmul.f32 0.2, %v2938_v21  ;;  %v2943_v62 = vmul.f32 0.2, %v2939_v59  ;;  %v2945_v0 = vmul.f32 0.2, %v2941_v63 }
0x171b   :  { %v34_v59 = vld [vmem:[%s4333_s3 + $0x38] sm:$0xff] }
0x171c   :  { %3625 = vmatpush3.msra.mxu0 %v34_v59 }
0x171d   :  { %3634 = vmatprep.subr.mxu0 %v3779_v51 }
0x176f   :  { %v2671_v40 = vpop.f32.mrf.mxu1 }
0x1770   :  { %v2672_v41 = vadd.f32 %v2671_v40, %v4008_v37  ;;  %v2936_v37 = vld [vmem:[%s4332_s2 + $0x4] sm:$0x3] }
0x1771   :  { %v3613_v42 = vpop.f32.mrf.mxu1  ;;  %v2940_v53 = vsub.f32 %v2936_v37, %v3753_v30 }
0x1772   :  { %v2750_v43 = vadd.f32 %v2747_v38, %v2672_v41 }
0x1773   :  { %v2944_v56 = vmul.f32 0.2, %v2940_v53 }
0x1774   :  { %v3411_v45 = vmul.f32 -1.442695, %v2750_v43 }
0x1776   :  { %3747 = vpow2.f32 %v3411_v45 }
0x1783   :  { %v3748_v46 = vpop.eup %3747 }
0x1784   :  { %v2754_v47 = vadd.f32 1.0, %v3748_v46 }
0x1786   :  { %3749 = vrcp.f32 %v2754_v47 }
0x178b   :  { %v2759_v52 = vpop.permute.xlu0 %2758 }
0x1793   :  { %v3750_v49 = vpop.eup %3749 }
0x1794   :  { %v2761_v48 = vmul.f32 %v3750_v49, %v2759_v52  ;;  %v2768_v2 = vsub.f32 1.0, %v3750_v49  ;;  %v2774_v10 = vmul.f32 %v3750_v49, %v2498_v24  ;;  %v3006_v24 = vrot.slane %v2997_v12, %v3870_v26 }
0x1796   :  { %2763 = vrot.lane.b32.xlu1 %v2761_v48, %s3783_s22  ;;  %v3014_v31 = vcombine.high %v3006_v24, %v3006_v24 }
0x179a   :  { %2948 = vperm.xlu1 %3656, %v2942_v32  }
0x179e   :  { %2972 = vperm.xlu1 %3656, %v2944_v56   ;;  %v32_v56 = vld [vmem:[%s4333_s3 + $0x28] sm:$0xff]  ;;  %s3785_s3 = smov [#allocation2]  }
0x1808   :  { %v2764_v55 = vpop.permute.xlu1 %2763 }
0x1809   :  { %v2766_v58 = vadd.f32 %v2764_v55, %v2672_v41 }
0x180b   :  { %3751 = vtanh.f32 %v2766_v58 }
0x1815   :  { %v2949_v15 = vpop.permute.xlu1 %2948 }
0x1816   :  { %v2957_v34 = vrot.slane %v2949_v15, %v3902_v3 }
0x1818   :  { %v3752_v61 = vpop.eup %3751  ;;  %v3020_v41 = vmul.f32 %v3006_v24, %v2957_v34 }
0x1819   :  { %2770 = vrot.lane.b32.xlu0 %v3752_v61, %s3784_s4  ;;  %v2973_v23 = vpop.permute.xlu1 %2972  ;;  %v2779_v61 = vrot.slane %v3754_v17, %v2778_v60 }
0x181a   :  { %v2981_v29 = vrot.slane %v2973_v23, %v3902_v3  ;;  %v3050_v46 = vadd.f32 %v3036_v8, %v3020_v41 }
0x181c   :  { %v3022_v38 = vmul.f32 %v3013_v19, %v2981_v29  ;;  %v3054_v21 = vmul.f32 0.1, %v3050_v46 }
0x181d   :  { %2960 = vperm.xlu0 %3655, %v2943_v62   ;;  %v40_v62 = vld [vmem:[%s4335_s5 + $0x8] sm:$0x7] }
0x181e   :  { %v3052_v43 = vadd.f32 %v3043_v28, %v3022_v38  ;;  %v3058_v48 = vmax.f32 %v3050_v46, %v3054_v21  ;;  %v3065_v1 = vrot.slane %v40_v62, %v3893_v54  ;;  %v41_v54 = vld [vmem:[%s4336_s6] sm:$0xff]  ;;  %v2860_v15 = vrot.slane %v40_v62, %v398_v50  ;;  %s3356_s6 = sshll.u32 %s3785_s3, 4  ;;  %s3357_s6 = int_to_ptr.vmem [resolvable:$true] %s3356_s6 }
0x181f   :  { %v3250_v28 = vrot.slane %v40_v62, %v488_v4  ;;  %s3755_s25 = scalar_lea.vmem %s3357_s6, 128  ;;  %p3760_p1 = scmp.lt.s32.totalorder %s3357_s6, %s3357_s6 }
0x1820   :  { %v3056_v44 = vmul.f32 0.1, %v3052_v43  ;;  %p3756_p0 = scmp.ne.s32.totalorder %s3357_s6, %s3755_s25  ;;  %p3761_p2 = scmp.lt.s32.totalorder %s3755_s25, %s3755_s25 }
0x1821   :  { %2984 = vperm.xlu0 %3655, %v2945_v0  }
0x1822   :  { %v3060_v52 = vmax.f32 %v3052_v43, %v3056_v44  ;;  %p3762_p3 = por %p3761_p2, %p3760_p1 }
0x1824   :  { %p3763_p4 = pnand %p3762_p3, %p3756_p0 }
0x188b   :  { %v2771_v5 = vpop.permute.xlu0 %2770 }
0x188c   :  { %v2773_v9 = vmul.f32 %v2771_v5, %v2768_v2 }
0x188e   :  { %v2775_v57 = vadd.f32 %v2774_v10, %v2773_v9 }
0x1890   :  { %2781 = vrot.lane.b32.xlu1 %v2775_v57, %s3784_s4 }
0x1898   :  { %v2961_v7 = vpop.permute.xlu0 %2960 }
0x1899   :  { %v2969_v33 = vrot.slane %v2961_v7, %v3902_v3 }
0x189b   :  { %v3021_v40 = vmul.f32 %v3014_v31, %v2969_v33 }
0x189c   :  { %v2985_v14 = vpop.permute.xlu0 %2984 }
0x189d   :  { %v2993_v27 = vrot.slane %v2985_v14, %v3902_v3  ;;  %v3051_v45 = vadd.f32 %v3044_v39, %v3021_v40 }
0x189f   :  { %v3023_v36 = vmul.f32 %v3015_v25, %v2993_v27  ;;  %v3055_v30 = vmul.f32 0.1, %v3051_v45 }
0x18a1   :  { %v3053_v42 = vadd.f32 %v3045_v35, %v3023_v36  ;;  %v3059_v37 = vmax.f32 %v3051_v45, %v3055_v30 }
0x18a3   :  { %v3057_v47 = vmul.f32 0.1, %v3053_v42  ;;  %v3070_v3 = vcombine.low %v3058_v48, %v3059_v37 }
0x18a5   :  { %v3061_v49 = vmax.f32 %v3053_v42, %v3057_v47  ;;  %v3078_v58 = vrot.slane %v3070_v3, %v3870_v26 }
0x18a7   :  { %v3071_v32 = vcombine.low %v3060_v52, %v3061_v49 }
0x18a9   :  { %v3085_v53 = vrot.slane %v3071_v32, %v3870_v26 }
0x18ab   :  { %v3086_v20 = vcombine.low %v3078_v58, %v3085_v53 }
0x1902   :  { %v2782_v55 = vpop.permute.xlu1 %2781 }
0x1903   :  { %3622 = vmatmul.mubr.msk.f32.vlgmr.msra.gmra.mxu1 %vm400_vm2, %v2782_v55 }
0x1904   :  { %3630 = vmatpush3.msra.mxu1 %v32_v56  ;;  %3631 = vmatprep.mubr.msk.f32.mxu1 %vm3781_vm3, %v3779_v51 }
0x1905   :  { %3639 = vmatprep.subr.mxu1 %v3779_v51 }
0x1907   :  { %3632 = vmatmul.mubr.msk.f32.vlgmr.msra.gmra.mxu1 %vm400_vm2, %v3086_v20 }
0x1908   :  { %3641 = vmatprep.mubr.msk.f32.mxu1 %vm3781_vm3, %v3779_v51  ;;  %3640 = vmatpush3.msra.mxu1 %v41_v54 }
0x19c3   :  { %v2851_v63 = vpop.f32.mrf.mxu1 }
0x19c4   :  { %v2852_v0 = vadd.f32 %v2851_v63, %v2779_v61 }
0x19c5   :  { %v3623_v2 = vpop.f32.mrf.mxu1 }
0x19c6   :  { %v2855_v5 = vmul.f32 0.1, %v2852_v0 }
0x19c7   :  { %v3155_v10 = vpop.f32.mrf.mxu1 }
0x19c8   :  { %v2856_v9 = vmax.f32 %v2852_v0, %v2855_v5  ;;  %v3156_v57 = vadd.f32 %v3155_v10, %v3065_v1 }
0x19c9   :  { %v3633_v7 = vpop.f32.mrf.mxu1 }
0x19ca   :  { %v3159_v12 = vmul.f32 0.1, %v3156_v57  ;;  %3627 = vmatmul.mubr.msk.f32.vlgmr.msra.gmra.mxu0 %vm400_vm2, %v2856_v9 }
0x19cb   :  { %3635 = vmatpush3.msra.mxu0 %v33_v11  ;;  %3636 = vmatprep.mubr.msk.f32.mxu0 %vm3781_vm3, %v3779_v51 }
0x19cc   :  { %v3160_v13 = vmax.f32 %v3156_v57, %v3159_v12 }
0x19ce   :  { %3637 = vmatmul.mubr.msk.f32.vlgmr.msra.gmra.mxu0 %vm400_vm2, %v3160_v13 }
0x1a8a   :  { %v2930_v16 = vpop.f32.mrf.mxu0 }
0x1a8b   :  { %v2931_v17 = vadd.f32 %v2930_v16, %v2860_v15 }
0x1a8c   :  { %v3628_v18 = vpop.f32.mrf.mxu0 }
0x1a8d   :  { %v3162_v14 = vcombine.low %v2931_v17, %v2931_v17 }
0x1a8e   :  { %v3241_v19 = vpop.f32.mrf.mxu0 }
0x1a8f   :  { %v3169_v22 = vrot.slane %v3162_v14, %v3870_v26 }
0x1a90   :  { %v3638_v23 = vpop.f32.mrf.mxu0 }
0x1a91   :  { %v3170_v51 = vcombine.low %v3169_v22, %v3169_v22 }
0x1a93   :  { %v3242_v24 = vadd.f32 %v3241_v19, %v3170_v51 }
0x1a95   :  { %v3245_v25 = vmul.f32 0.1, %v3242_v24 }
0x1a97   :  { %v3246_v27 = vmax.f32 %v3242_v24, %v3245_v25 }
0x1a99   :  { %3642 = vmatmul.mubr.msk.f32.vlgmr.msra.gmra.mxu1 %vm400_vm2, %v3246_v27 }
0x1b59   :  { %v3320_v29 = vpop.f32.mrf.mxu1 }
0x1b5a   :  { %v3321_v31 = vadd.f32 %v3320_v29, %v3250_v28 }
0x1b5b   :  { %v3643_v50 = vpop.f32.mrf.mxu1 }
0x1b5c   :  { %v3325_v33 = vcombine.high %v3321_v31, %v3321_v31  ;;  %v3332_v8 = vrot.slane %v3321_v31, %v3870_v26 }
0x1b5e   :  { %v3339_v34 = vrot.slane %v3325_v33, %v3870_v26  ;;  %v3340_v35 = vcombine.high %v3332_v8, %v3332_v8  ;;  %3347 = vst.msk [vmem:[#allocation2] sm:$0x3] %vm3346_vm4, %v3332_v8 }
0x1b60   :  { %v3341_v36 = vcombine.high %v3339_v34, %v3339_v34  ;;  %3348 = vst.msk [vmem:[#allocation2 + $0x2] sm:$0x3] %vm3346_vm4, %v3340_v35  ;;  %3349 = vst.msk [vmem:[#allocation2 + $0x4] sm:$0x3] %vm3346_vm4, %v3339_v34 }
0x1b62   :  { %3350 = vst.msk [vmem:[#allocation2 + $0x6] sm:$0x3] %vm3346_vm4, %v3341_v36 }
0x1b63   :  { %3766 = shalt.err (!%p3763_p4)
}
0x1b64   :  { %s3786_s4 = smov 32   ;;  %s3787_s26 = smov 2  }
0x1b65   :  { %3362 = dma.vmem_to_hbm [thread:$0]  %s3357_s6, 128, %s4337_s7, [#allocation3], %s3786_s4, %s3786_s4, %s3787_s26  }
0x1b66   :  { %3775 = dma.done.wait [#allocation3], 128  }
0x1b67   :  { %3776 = vsyncadd [#allocation3], 4294967168 }
0x1b68   :  { %3366 = vsyncpa [#allocation3], 1 }

</bundles_post_ra>
